<compile_context>
chip_gen: v7x
topology: tpu7x:2x2x1
jax: 0.10.0
libtpu: 0.0.40
codegen_flags: <defaults>
</compile_context>

<pallas_src>
import jax
import jax.numpy as jnp
from jax import lax
from jax.experimental import pallas as pl
from jax.experimental.pallas import tpu as pltpu


def _round_up(x, m):
    return ((x + m - 1) // m) * m


# ----------------------------- Pallas kernel --------------------------------
def _make_gru_kernel(T_real, Tc, Bp, Hp, need_mask, unroll):
    """GRU recurrence over one time-chunk per grid step.

    x_gates_ref : (Tc, Bp, 3*Hp)  precomputed x @ W_ih^T + b_ih (+ b_hr/b_hz folded)
    w_hh_t_ref  : (Hp, 3*Hp)      W_hh^T (zero-padded)
    b_hn_ref    : (1, Hp)         n-gate recurrent bias (zero-padded)
    h_ref       : (Bp, Hp)        hidden-state carry / final output (resident block)
    """
    def kernel(x_gates_ref, w_hh_t_ref, b_hn_ref, h_ref):
        i = pl.program_id(0)

        @pl.when(i == 0)
        def _():
            h_ref[...] = jnp.zeros_like(h_ref)

        w_hh_t = w_hh_t_ref[...]                                   # loaded once / chunk
        # Hoist the bias broadcast out of the time loop (JAX does not CSE broadcasts).
        b_hn = jnp.broadcast_to(b_hn_ref[...], (Bp, Hp))

        def step(t, h):
            xg = x_gates_ref[t]                                    # (Bp, 3*Hp)
            hg = jnp.dot(h, w_hh_t, preferred_element_type=jnp.float32)
            # PyTorch GRU gate order (r, z, n); slices lane-aligned (Hp % 128 == 0).
            r = jax.nn.sigmoid(xg[:, 0:Hp] + hg[:, 0:Hp])
            z = jax.nn.sigmoid(xg[:, Hp:2 * Hp] + hg[:, Hp:2 * Hp])
            n = jnp.tanh(xg[:, 2 * Hp:3 * Hp] + r * (hg[:, 2 * Hp:3 * Hp] + b_hn))
            h_new = (1.0 - z) * n + z * h
            if need_mask:  # static: only emitted when T was padded up to a chunk multiple
                h_new = jnp.where(i * Tc + t < T_real, h_new, h)
            return h_new

        h_ref[...] = lax.fori_loop(0, Tc, step, h_ref[...], unroll=unroll)

    return kernel


# ------------------------------ Wrapper --------------------------------------
def char_rnn_forward(x, params, *, max_time_chunk=128):
    """x: (B, T) int32 token ids. Returns (B, 1) float32."""
    B, T = x.shape
    V, E = params["embedding"].shape
    H = params["b_hh"].shape[0] // 3

    Bp = _round_up(max(B, 8), 8)       # sublane-aligned batch
    Hp = _round_up(H, 128)             # lane-aligned hidden size (per gate)

    # Time-chunk size: keep the double-buffered x_gates chunk under ~8 MiB.
    per_step_bytes = 2 * Bp * 3 * Hp * 4
    Tc = max(1, min(T, max_time_chunk, (8 << 20) // per_step_bytes))
    Tp = _round_up(T, Tc)
    n_chunks = Tp // Tc
    need_mask = Tp != T

    # ---- Input-side work hoisted out of the recurrence (one big matmul, directly in
    #      (T, B, 3H) layout).  Fold b_ih and the r/z halves of b_hh in; b_hn stays
    #      in-kernel (must be inside r*(.) to match nn.GRU).
    b_fold = params["b_ih"] + jnp.concatenate(
        [params["b_hh"][:2 * H], jnp.zeros((H,), jnp.float32)])
    emb = params["embedding"][x]                                       # (B, T, E) gather
    xg = jnp.einsum("bte,ge->tbg", emb, params["w_ih"]) + b_fold       # (T, B, 3H)
    xg = xg.reshape(T, B, 3, H)
    xg = jnp.pad(xg, ((0, Tp - T), (0, Bp - B), (0, 0), (0, Hp - H)))
    x_gates = xg.reshape(Tp, Bp, 3 * Hp)                               # (Tp, Bp, 3*Hp)

    # ---- Zero-padded recurrent weight (per-gate padding H -> Hp) and n-gate bias.
    w_hh_t = params["w_hh"].T.reshape(H, 3, H)
    w_hh_t = jnp.pad(w_hh_t, ((0, Hp - H), (0, 0), (0, Hp - H))).reshape(Hp, 3 * Hp)
    b_hn = jnp.pad(params["b_hh"][2 * H:], (0, Hp - H)).reshape(1, Hp)

    # ---- Explicit scoped-VMEM budget (default is only 16/32 MiB; cap v7x-safe).
    vmem_bytes = (2 * Tc * Bp * 3 * Hp     # x_gates chunk, double-buffered
                  + 2 * Hp * 3 * Hp        # W_hh^T
                  + 2 * 8 * Hp             # b_hn (tile-padded)
                  + 2 * Bp * Hp) * 4       # resident hidden-state / output block
    vmem_limit = int(min(max(2 * vmem_bytes + (4 << 20), 32 << 20), 64 << 20))

    # Bounded unroll: full unroll only for tiny chunks (the recurrence is serial, so
    # deeper unroll just inflates live ranges / i-mem).
    unroll = True if Tc <= 8 else 8

    kernel = _make_gru_kernel(T, Tc, Bp, Hp, need_mask, unroll)

    grid_spec = pltpu.PrefetchScalarGridSpec(
        num_scalar_prefetch=0,
        grid=(n_chunks,),
        in_specs=[
            pl.BlockSpec((Tc, Bp, 3 * Hp), lambda i: (i, 0, 0)),   # x_gates time-chunk
            pl.BlockSpec((Hp, 3 * Hp), lambda i: (0, 0)),          # W_hh^T (invariant)
            pl.BlockSpec((1, Hp), lambda i: (0, 0)),               # b_hn   (invariant)
        ],
        out_specs=pl.BlockSpec((Bp, Hp), lambda i: (0, 0)),        # resident h carry
    )

    h_last = pl.pallas_call(
        kernel,
        out_shape=jax.ShapeDtypeStruct((Bp, Hp), jnp.float32),
        grid_spec=grid_spec,
        compiler_params=pltpu.CompilerParams(
            dimension_semantics=("arbitrary",),
            vmem_limit_bytes=vmem_limit),
    )(x_gates, w_hh_t, b_hn)

    # ---- Final Linear(H, 1) runs once -> fold into the wrapper (lane-sparse otherwise).
    h_last = h_last[:B, :H]
    return h_last @ params["w_fc"].T + params["b_fc"]


# ------------------------- Pure-JAX reference ---------------------------------
def char_rnn_reference(x, params):
    emb = params["embedding"][x]                      # (B, T, E)
    H = params["b_hh"].shape[0] // 3
    w_ih, w_hh = params["w_ih"], params["w_hh"]
    b_ih, b_hh = params["b_ih"], params["b_hh"]

    def step(h, x_t):
        xg = x_t @ w_ih.T + b_ih
        hg = h @ w_hh.T + b_hh
        r = jax.nn.sigmoid(xg[:, :H] + hg[:, :H])
        z = jax.nn.sigmoid(xg[:, H:2 * H] + hg[:, H:2 * H])
        n = jnp.tanh(xg[:, 2 * H:] + r * hg[:, 2 * H:])
        return (1.0 - z) * n + z * h, None

    h0 = jnp.zeros((x.shape[0], H), jnp.float32)
    h_last, _ = lax.scan(step, h0, emb.transpose(1, 0, 2))
    return h_last @ params["w_fc"].T + params["b_fc"]


# ------------------------------- Params ---------------------------------------
def init_params(key, vocab_size, embed_size=32, hidden_size=64):
    ks = jax.random.split(key, 7)
    bound = 1.0 / jnp.sqrt(hidden_size)
    return {
        # nn.Embedding: N(0, 1)
        "embedding": jax.random.normal(ks[0], (vocab_size, embed_size), jnp.float32),
        # nn.GRU: U(-1/sqrt(H), 1/sqrt(H)); gate order (r, z, n) along rows
        "w_ih": jax.random.uniform(ks[1], (3 * hidden_size, embed_size),
                                   jnp.float32, -bound, bound),
        "w_hh": jax.random.uniform(ks[2], (3 * hidden_size, hidden_size),
                                   jnp.float32, -bound, bound),
        "b_ih": jax.random.uniform(ks[3], (3 * hidden_size,),
                                   jnp.float32, -bound, bound),
        "b_hh": jax.random.uniform(ks[4], (3 * hidden_size,),
                                   jnp.float32, -bound, bound),
        # nn.Linear(hidden, 1)
        "w_fc": jax.random.uniform(ks[5], (1, hidden_size),
                                   jnp.float32, -bound, bound),
        "b_fc": jax.random.uniform(ks[6], (1,),
                                   jnp.float32, -bound, bound),
    }


if __name__ == "__main__":
    VOCAB, EMBED, HIDDEN = 64, 32, 64
    B, T = 2, 8

    key = jax.random.PRNGKey(0)
    k_param, k_x = jax.random.split(key)
    params = init_params(k_param, VOCAB, EMBED, HIDDEN)
    x = jax.random.randint(k_x, (B, T), 0, VOCAB, dtype=jnp.int32)

    out = jax.block_until_ready(char_rnn_forward(x, params))
    ref = jax.block_until_ready(char_rnn_reference(x, params))

    assert out.shape == (B, 1), out.shape
    assert jnp.allclose(out, ref, atol=1e-4, rtol=1e-4), (out, ref)
    print("KERNEL_OK")
</pallas_src>

<mosaic_0001>
module attributes {stable_mosaic.version = 11 : i64} {
  func.func @kernel(%arg0: i32, %arg1: memref<8x8x384xf32, #tpu.memory_space<vmem>>, %arg2: memref<128x384xf32, #tpu.memory_space<vmem>>, %arg3: memref<1x128xf32, #tpu.memory_space<vmem>>, %arg4: memref<8x128xf32, #tpu.memory_space<vmem>>) attributes {dimension_semantics = [#tpu.dimension_semantics<arbitrary>], iteration_bounds = array<i64: 1>, scalar_prefetch = 0 : i64, scratch_operands = 0 : i64, tpu.core_type = #tpu.core_type<tc>, window_params = [{transform_indices = @transform_0, window_bounds = array<i64: 8, 8, 384>}, {pipeline_mode = #tpu.pipeline_mode<synchronous>, transform_indices = @transform_1, window_bounds = array<i64: 128, 384>}, {pipeline_mode = #tpu.pipeline_mode<synchronous>, transform_indices = @transform_2, window_bounds = array<i64: 1, 128>}, {pipeline_mode = #tpu.pipeline_mode<synchronous>, transform_indices = @transform_3, window_bounds = array<i64: 8, 128>}]} {
    %c0_i32 = arith.constant 0 : i32
    %0 = arith.cmpi eq, %arg0, %c0_i32 : i32
    %1 = arith.extui %0 : i1 to i32
    %c0_i32_0 = arith.constant 0 : i32
    %2 = arith.cmpi ne, %1, %c0_i32_0 : i32
    scf.if %2 {
      %cst_56 = arith.constant 0.000000e+00 : f32
      %257 = vector.broadcast %cst_56 : f32 to vector<8x128xf32>
      %c0_57 = arith.constant 0 : index
      %c0_58 = arith.constant 0 : index
      %258 = vector.load %arg4[%c0_57, %c0_58] : memref<8x128xf32, #tpu.memory_space<vmem>>, vector<8x128xf32>
      tpu.vector_store %arg4[%c0_57, %c0_58], %257 {strides = array<i32>} : memref<8x128xf32, #tpu.memory_space<vmem>>, vector<8x128xf32>,
    } else {
    }
    %c0 = arith.constant 0 : index
    %c0_1 = arith.constant 0 : index
    %3 = vector.load %arg2[%c0, %c0_1] : memref<128x384xf32, #tpu.memory_space<vmem>>, vector<128x384xf32>
    %c0_2 = arith.constant 0 : index
    %c0_3 = arith.constant 0 : index
    %4 = vector.load %arg3[%c0_2, %c0_3] : memref<1x128xf32, #tpu.memory_space<vmem>>, vector<1x128xf32>
    %5 = vector.shape_cast %4 : vector<1x128xf32> to vector<1x128xf32>
    %6 = vector.broadcast %5 : vector<1x128xf32> to vector<8x128xf32>
    %c0_4 = arith.constant 0 : index
    %c0_5 = arith.constant 0 : index
    %7 = vector.load %arg4[%c0_4, %c0_5] : memref<8x128xf32, #tpu.memory_space<vmem>>, vector<8x128xf32>
    %c0_i32_6 = arith.constant 0 : i32
    %8 = arith.index_cast %c0_i32_6 : i32 to index
    %c0_7 = arith.constant 0 : index
    %c0_8 = arith.constant 0 : index
    %9 = vector.load %arg1[%8, %c0_7, %c0_8] : memref<8x8x384xf32, #tpu.memory_space<vmem>>, vector<1x8x384xf32>
    %10 = vector.shape_cast %9 : vector<1x8x384xf32> to vector<8x384xf32>
    %cst = arith.constant dense<0.000000e+00> : vector<8x384xf32>
    %11 = tpu.matmul %7, %3, %cst {dimension_numbers = #tpu.dot_dimension_numbers<[1], [0], [0], [1], [0, 0, 1, 1], [], []>} : vector<8x128xf32>, vector<128x384xf32>, vector<8x384xf32> -> vector<8x384xf32>
    %12 = vector.extract_strided_slice %10 {offsets = [0, 0], sizes = [8, 128], strides = [1, 1]} : vector<8x384xf32> to vector<8x128xf32>
    %13 = vector.extract_strided_slice %11 {offsets = [0, 0], sizes = [8, 128], strides = [1, 1]} : vector<8x384xf32> to vector<8x128xf32>
    %14 = arith.addf %12, %13 : vector<8x128xf32>
    %15 = arith.negf %14 : vector<8x128xf32>
    %16 = math.exp %15 : vector<8x128xf32>
    %cst_9 = arith.constant 1.000000e+00 : f32
    %17 = vector.broadcast %cst_9 : f32 to vector<8x128xf32>
    %18 = arith.addf %17, %16 : vector<8x128xf32>
    %19 = arith.divf %17, %18 : vector<8x128xf32>
    %20 = vector.extract_strided_slice %10 {offsets = [0, 128], sizes = [8, 128], strides = [1, 1]} : vector<8x384xf32> to vector<8x128xf32>
    %21 = vector.extract_strided_slice %11 {offsets = [0, 128], sizes = [8, 128], strides = [1, 1]} : vector<8x384xf32> to vector<8x128xf32>
    %22 = arith.addf %20, %21 : vector<8x128xf32>
    %23 = arith.negf %22 : vector<8x128xf32>
    %24 = math.exp %23 : vector<8x128xf32>
    %cst_10 = arith.constant 1.000000e+00 : f32
    %25 = vector.broadcast %cst_10 : f32 to vector<8x128xf32>
    %26 = arith.addf %25, %24 : vector<8x128xf32>
    %27 = arith.divf %25, %26 : vector<8x128xf32>
    %28 = vector.extract_strided_slice %10 {offsets = [0, 256], sizes = [8, 128], strides = [1, 1]} : vector<8x384xf32> to vector<8x128xf32>
    %29 = vector.extract_strided_slice %11 {offsets = [0, 256], sizes = [8, 128], strides = [1, 1]} : vector<8x384xf32> to vector<8x128xf32>
    %30 = arith.addf %29, %6 : vector<8x128xf32>
    %31 = arith.mulf %19, %30 : vector<8x128xf32>
    %32 = arith.addf %28, %31 : vector<8x128xf32>
    %33 = math.tanh %32 : vector<8x128xf32>
    %cst_11 = arith.constant 1.000000e+00 : f32
    %34 = vector.broadcast %cst_11 : f32 to vector<8x128xf32>
    %35 = arith.subf %34, %27 : vector<8x128xf32>
    %36 = arith.mulf %35, %33 : vector<8x128xf32>
    %37 = arith.mulf %27, %7 : vector<8x128xf32>
    %38 = arith.addf %36, %37 : vector<8x128xf32>
    %c1_i32 = arith.constant 1 : i32
    %39 = arith.index_cast %c1_i32 : i32 to index
    %c0_12 = arith.constant 0 : index
    %c0_13 = arith.constant 0 : index
    %40 = vector.load %arg1[%39, %c0_12, %c0_13] : memref<8x8x384xf32, #tpu.memory_space<vmem>>, vector<1x8x384xf32>
    %41 = vector.shape_cast %40 : vector<1x8x384xf32> to vector<8x384xf32>
    %cst_14 = arith.constant dense<0.000000e+00> : vector<8x384xf32>
    %42 = tpu.matmul %38, %3, %cst_14 {dimension_numbers = #tpu.dot_dimension_numbers<[1], [0], [0], [1], [0, 0, 1, 1], [], []>} : vector<8x128xf32>, vector<128x384xf32>, vector<8x384xf32> -> vector<8x384xf32>
    %43 = vector.extract_strided_slice %41 {offsets = [0, 0], sizes = [8, 128], strides = [1, 1]} : vector<8x384xf32> to vector<8x128xf32>
    %44 = vector.extract_strided_slice %42 {offsets = [0, 0], sizes = [8, 128], strides = [1, 1]} : vector<8x384xf32> to vector<8x128xf32>
    %45 = arith.addf %43, %44 : vector<8x128xf32>
    %46 = arith.negf %45 : vector<8x128xf32>
    %47 = math.exp %46 : vector<8x128xf32>
    %cst_15 = arith.constant 1.000000e+00 : f32
    %48 = vector.broadcast %cst_15 : f32 to vector<8x128xf32>
    %49 = arith.addf %48, %47 : vector<8x128xf32>
    %50 = arith.divf %48, %49 : vector<8x128xf32>
    %51 = vector.extract_strided_slice %41 {offsets = [0, 128], sizes = [8, 128], strides = [1, 1]} : vector<8x384xf32> to vector<8x128xf32>
    %52 = vector.extract_strided_slice %42 {offsets = [0, 128], sizes = [8, 128], strides = [1, 1]} : vector<8x384xf32> to vector<8x128xf32>
    %53 = arith.addf %51, %52 : vector<8x128xf32>
    %54 = arith.negf %53 : vector<8x128xf32>
    %55 = math.exp %54 : vector<8x128xf32>
    %cst_16 = arith.constant 1.000000e+00 : f32
    %56 = vector.broadcast %cst_16 : f32 to vector<8x128xf32>
    %57 = arith.addf %56, %55 : vector<8x128xf32>
    %58 = arith.divf %56, %57 : vector<8x128xf32>
    %59 = vector.extract_strided_slice %41 {offsets = [0, 256], sizes = [8, 128], strides = [1, 1]} : vector<8x384xf32> to vector<8x128xf32>
    %60 = vector.extract_strided_slice %42 {offsets = [0, 256], sizes = [8, 128], strides = [1, 1]} : vector<8x384xf32> to vector<8x128xf32>
    %61 = arith.addf %60, %6 : vector<8x128xf32>
    %62 = arith.mulf %50, %61 : vector<8x128xf32>
    %63 = arith.addf %59, %62 : vector<8x128xf32>
    %64 = math.tanh %63 : vector<8x128xf32>
    %cst_17 = arith.constant 1.000000e+00 : f32
    %65 = vector.broadcast %cst_17 : f32 to vector<8x128xf32>
    %66 = arith.subf %65, %58 : vector<8x128xf32>
    %67 = arith.mulf %66, %64 : vector<8x128xf32>
    %68 = arith.mulf %58, %38 : vector<8x128xf32>
    %69 = arith.addf %67, %68 : vector<8x128xf32>
    %c2_i32 = arith.constant 2 : i32
    %70 = arith.index_cast %c2_i32 : i32 to index
    %c0_18 = arith.constant 0 : index
    %c0_19 = arith.constant 0 : index
    %71 = vector.load %arg1[%70, %c0_18, %c0_19] : memref<8x8x384xf32, #tpu.memory_space<vmem>>, vector<1x8x384xf32>
    %72 = vector.shape_cast %71 : vector<1x8x384xf32> to vector<8x384xf32>
    %cst_20 = arith.constant dense<0.000000e+00> : vector<8x384xf32>
    %73 = tpu.matmul %69, %3, %cst_20 {dimension_numbers = #tpu.dot_dimension_numbers<[1], [0], [0], [1], [0, 0, 1, 1], [], []>} : vector<8x128xf32>, vector<128x384xf32>, vector<8x384xf32> -> vector<8x384xf32>
    %74 = vector.extract_strided_slice %72 {offsets = [0, 0], sizes = [8, 128], strides = [1, 1]} : vector<8x384xf32> to vector<8x128xf32>
    %75 = vector.extract_strided_slice %73 {offsets = [0, 0], sizes = [8, 128], strides = [1, 1]} : vector<8x384xf32> to vector<8x128xf32>
    %76 = arith.addf %74, %75 : vector<8x128xf32>
    %77 = arith.negf %76 : vector<8x128xf32>
    %78 = math.exp %77 : vector<8x128xf32>
    %cst_21 = arith.constant 1.000000e+00 : f32
    %79 = vector.broadcast %cst_21 : f32 to vector<8x128xf32>
    %80 = arith.addf %79, %78 : vector<8x128xf32>
    %81 = arith.divf %79, %80 : vector<8x128xf32>
    %82 = vector.extract_strided_slice %72 {offsets = [0, 128], sizes = [8, 128], strides = [1, 1]} : vector<8x384xf32> to vector<8x128xf32>
    %83 = vector.extract_strided_slice %73 {offsets = [0, 128], sizes = [8, 128], strides = [1, 1]} : vector<8x384xf32> to vector<8x128xf32>
    %84 = arith.addf %82, %83 : vector<8x128xf32>
    %85 = arith.negf %84 : vector<8x128xf32>
    %86 = math.exp %85 : vector<8x128xf32>
    %cst_22 = arith.constant 1.000000e+00 : f32
    %87 = vector.broadcast %cst_22 : f32 to vector<8x128xf32>
    %88 = arith.addf %87, %86 : vector<8x128xf32>
    %89 = arith.divf %87, %88 : vector<8x128xf32>
    %90 = vector.extract_strided_slice %72 {offsets = [0, 256], sizes = [8, 128], strides = [1, 1]} : vector<8x384xf32> to vector<8x128xf32>
    %91 = vector.extract_strided_slice %73 {offsets = [0, 256], sizes = [8, 128], strides = [1, 1]} : vector<8x384xf32> to vector<8x128xf32>
    %92 = arith.addf %91, %6 : vector<8x128xf32>
    %93 = arith.mulf %81, %92 : vector<8x128xf32>
    %94 = arith.addf %90, %93 : vector<8x128xf32>
    %95 = math.tanh %94 : vector<8x128xf32>
    %cst_23 = arith.constant 1.000000e+00 : f32
    %96 = vector.broadcast %cst_23 : f32 to vector<8x128xf32>
    %97 = arith.subf %96, %89 : vector<8x128xf32>
    %98 = arith.mulf %97, %95 : vector<8x128xf32>
    %99 = arith.mulf %89, %69 : vector<8x128xf32>
    %100 = arith.addf %98, %99 : vector<8x128xf32>
    %c3_i32 = arith.constant 3 : i32
    %101 = arith.index_cast %c3_i32 : i32 to index
    %c0_24 = arith.constant 0 : index
    %c0_25 = arith.constant 0 : index
    %102 = vector.load %arg1[%101, %c0_24, %c0_25] : memref<8x8x384xf32, #tpu.memory_space<vmem>>, vector<1x8x384xf32>
    %103 = vector.shape_cast %102 : vector<1x8x384xf32> to vector<8x384xf32>
    %cst_26 = arith.constant dense<0.000000e+00> : vector<8x384xf32>
    %104 = tpu.matmul %100, %3, %cst_26 {dimension_numbers = #tpu.dot_dimension_numbers<[1], [0], [0], [1], [0, 0, 1, 1], [], []>} : vector<8x128xf32>, vector<128x384xf32>, vector<8x384xf32> -> vector<8x384xf32>
    %105 = vector.extract_strided_slice %103 {offsets = [0, 0], sizes = [8, 128], strides = [1, 1]} : vector<8x384xf32> to vector<8x128xf32>
    %106 = vector.extract_strided_slice %104 {offsets = [0, 0], sizes = [8, 128], strides = [1, 1]} : vector<8x384xf32> to vector<8x128xf32>
    %107 = arith.addf %105, %106 : vector<8x128xf32>
    %108 = arith.negf %107 : vector<8x128xf32>
    %109 = math.exp %108 : vector<8x128xf32>
    %cst_27 = arith.constant 1.000000e+00 : f32
    %110 = vector.broadcast %cst_27 : f32 to vector<8x128xf32>
    %111 = arith.addf %110, %109 : vector<8x128xf32>
    %112 = arith.divf %110, %111 : vector<8x128xf32>
    %113 = vector.extract_strided_slice %103 {offsets = [0, 128], sizes = [8, 128], strides = [1, 1]} : vector<8x384xf32> to vector<8x128xf32>
    %114 = vector.extract_strided_slice %104 {offsets = [0, 128], sizes = [8, 128], strides = [1, 1]} : vector<8x384xf32> to vector<8x128xf32>
    %115 = arith.addf %113, %114 : vector<8x128xf32>
    %116 = arith.negf %115 : vector<8x128xf32>
    %117 = math.exp %116 : vector<8x128xf32>
    %cst_28 = arith.constant 1.000000e+00 : f32
    %118 = vector.broadcast %cst_28 : f32 to vector<8x128xf32>
    %119 = arith.addf %118, %117 : vector<8x128xf32>
    %120 = arith.divf %118, %119 : vector<8x128xf32>
    %121 = vector.extract_strided_slice %103 {offsets = [0, 256], sizes = [8, 128], strides = [1, 1]} : vector<8x384xf32> to vector<8x128xf32>
    %122 = vector.extract_strided_slice %104 {offsets = [0, 256], sizes = [8, 128], strides = [1, 1]} : vector<8x384xf32> to vector<8x128xf32>
    %123 = arith.addf %122, %6 : vector<8x128xf32>
    %124 = arith.mulf %112, %123 : vector<8x128xf32>
    %125 = arith.addf %121, %124 : vector<8x128xf32>
    %126 = math.tanh %125 : vector<8x128xf32>
    %cst_29 = arith.constant 1.000000e+00 : f32
    %127 = vector.broadcast %cst_29 : f32 to vector<8x128xf32>
    %128 = arith.subf %127, %120 : vector<8x128xf32>
    %129 = arith.mulf %128, %126 : vector<8x128xf32>
    %130 = arith.mulf %120, %100 : vector<8x128xf32>
    %131 = arith.addf %129, %130 : vector<8x128xf32>
    %c4_i32 = arith.constant 4 : i32
    %132 = arith.index_cast %c4_i32 : i32 to index
    %c0_30 = arith.constant 0 : index
    %c0_31 = arith.constant 0 : index
    %133 = vector.load %arg1[%132, %c0_30, %c0_31] : memref<8x8x384xf32, #tpu.memory_space<vmem>>, vector<1x8x384xf32>
    %134 = vector.shape_cast %133 : vector<1x8x384xf32> to vector<8x384xf32>
    %cst_32 = arith.constant dense<0.000000e+00> : vector<8x384xf32>
    %135 = tpu.matmul %131, %3, %cst_32 {dimension_numbers = #tpu.dot_dimension_numbers<[1], [0], [0], [1], [0, 0, 1, 1], [], []>} : vector<8x128xf32>, vector<128x384xf32>, vector<8x384xf32> -> vector<8x384xf32>
    %136 = vector.extract_strided_slice %134 {offsets = [0, 0], sizes = [8, 128], strides = [1, 1]} : vector<8x384xf32> to vector<8x128xf32>
    %137 = vector.extract_strided_slice %135 {offsets = [0, 0], sizes = [8, 128], strides = [1, 1]} : vector<8x384xf32> to vector<8x128xf32>
    %138 = arith.addf %136, %137 : vector<8x128xf32>
    %139 = arith.negf %138 : vector<8x128xf32>
    %140 = math.exp %139 : vector<8x128xf32>
    %cst_33 = arith.constant 1.000000e+00 : f32
    %141 = vector.broadcast %cst_33 : f32 to vector<8x128xf32>
    %142 = arith.addf %141, %140 : vector<8x128xf32>
    %143 = arith.divf %141, %142 : vector<8x128xf32>
    %144 = vector.extract_strided_slice %134 {offsets = [0, 128], sizes = [8, 128], strides = [1, 1]} : vector<8x384xf32> to vector<8x128xf32>
    %145 = vector.extract_strided_slice %135 {offsets = [0, 128], sizes = [8, 128], strides = [1, 1]} : vector<8x384xf32> to vector<8x128xf32>
    %146 = arith.addf %144, %145 : vector<8x128xf32>
    %147 = arith.negf %146 : vector<8x128xf32>
    %148 = math.exp %147 : vector<8x128xf32>
    %cst_34 = arith.constant 1.000000e+00 : f32
    %149 = vector.broadcast %cst_34 : f32 to vector<8x128xf32>
    %150 = arith.addf %149, %148 : vector<8x128xf32>
    %151 = arith.divf %149, %150 : vector<8x128xf32>
    %152 = vector.extract_strided_slice %134 {offsets = [0, 256], sizes = [8, 128], strides = [1, 1]} : vector<8x384xf32> to vector<8x128xf32>
    %153 = vector.extract_strided_slice %135 {offsets = [0, 256], sizes = [8, 128], strides = [1, 1]} : vector<8x384xf32> to vector<8x128xf32>
    %154 = arith.addf %153, %6 : vector<8x128xf32>
    %155 = arith.mulf %143, %154 : vector<8x128xf32>
    %156 = arith.addf %152, %155 : vector<8x128xf32>
    %157 = math.tanh %156 : vector<8x128xf32>
    %cst_35 = arith.constant 1.000000e+00 : f32
    %158 = vector.broadcast %cst_35 : f32 to vector<8x128xf32>
    %159 = arith.subf %158, %151 : vector<8x128xf32>
    %160 = arith.mulf %159, %157 : vector<8x128xf32>
    %161 = arith.mulf %151, %131 : vector<8x128xf32>
    %162 = arith.addf %160, %161 : vector<8x128xf32>
    %c5_i32 = arith.constant 5 : i32
    %163 = arith.index_cast %c5_i32 : i32 to index
    %c0_36 = arith.constant 0 : index
    %c0_37 = arith.constant 0 : index
    %164 = vector.load %arg1[%163, %c0_36, %c0_37] : memref<8x8x384xf32, #tpu.memory_space<vmem>>, vector<1x8x384xf32>
    %165 = vector.shape_cast %164 : vector<1x8x384xf32> to vector<8x384xf32>
    %cst_38 = arith.constant dense<0.000000e+00> : vector<8x384xf32>
    %166 = tpu.matmul %162, %3, %cst_38 {dimension_numbers = #tpu.dot_dimension_numbers<[1], [0], [0], [1], [0, 0, 1, 1], [], []>} : vector<8x128xf32>, vector<128x384xf32>, vector<8x384xf32> -> vector<8x384xf32>
    %167 = vector.extract_strided_slice %165 {offsets = [0, 0], sizes = [8, 128], strides = [1, 1]} : vector<8x384xf32> to vector<8x128xf32>
    %168 = vector.extract_strided_slice %166 {offsets = [0, 0], sizes = [8, 128], strides = [1, 1]} : vector<8x384xf32> to vector<8x128xf32>
    %169 = arith.addf %167, %168 : vector<8x128xf32>
    %170 = arith.negf %169 : vector<8x128xf32>
    %171 = math.exp %170 : vector<8x128xf32>
    %cst_39 = arith.constant 1.000000e+00 : f32
    %172 = vector.broadcast %cst_39 : f32 to vector<8x128xf32>
    %173 = arith.addf %172, %171 : vector<8x128xf32>
    %174 = arith.divf %172, %173 : vector<8x128xf32>
    %175 = vector.extract_strided_slice %165 {offsets = [0, 128], sizes = [8, 128], strides = [1, 1]} : vector<8x384xf32> to vector<8x128xf32>
    %176 = vector.extract_strided_slice %166 {offsets = [0, 128], sizes = [8, 128], strides = [1, 1]} : vector<8x384xf32> to vector<8x128xf32>
    %177 = arith.addf %175, %176 : vector<8x128xf32>
    %178 = arith.negf %177 : vector<8x128xf32>
    %179 = math.exp %178 : vector<8x128xf32>
    %cst_40 = arith.constant 1.000000e+00 : f32
    %180 = vector.broadcast %cst_40 : f32 to vector<8x128xf32>
    %181 = arith.addf %180, %179 : vector<8x128xf32>
    %182 = arith.divf %180, %181 : vector<8x128xf32>
    %183 = vector.extract_strided_slice %165 {offsets = [0, 256], sizes = [8, 128], strides = [1, 1]} : vector<8x384xf32> to vector<8x128xf32>
    %184 = vector.extract_strided_slice %166 {offsets = [0, 256], sizes = [8, 128], strides = [1, 1]} : vector<8x384xf32> to vector<8x128xf32>
    %185 = arith.addf %184, %6 : vector<8x128xf32>
    %186 = arith.mulf %174, %185 : vector<8x128xf32>
    %187 = arith.addf %183, %186 : vector<8x128xf32>
    %188 = math.tanh %187 : vector<8x128xf32>
    %cst_41 = arith.constant 1.000000e+00 : f32
    %189 = vector.broadcast %cst_41 : f32 to vector<8x128xf32>
    %190 = arith.subf %189, %182 : vector<8x128xf32>
    %191 = arith.mulf %190, %188 : vector<8x128xf32>
    %192 = arith.mulf %182, %162 : vector<8x128xf32>
    %193 = arith.addf %191, %192 : vector<8x128xf32>
    %c6_i32 = arith.constant 6 : i32
    %194 = arith.index_cast %c6_i32 : i32 to index
    %c0_42 = arith.constant 0 : index
    %c0_43 = arith.constant 0 : index
    %195 = vector.load %arg1[%194, %c0_42, %c0_43] : memref<8x8x384xf32, #tpu.memory_space<vmem>>, vector<1x8x384xf32>
    %196 = vector.shape_cast %195 : vector<1x8x384xf32> to vector<8x384xf32>
    %cst_44 = arith.constant dense<0.000000e+00> : vector<8x384xf32>
    %197 = tpu.matmul %193, %3, %cst_44 {dimension_numbers = #tpu.dot_dimension_numbers<[1], [0], [0], [1], [0, 0, 1, 1], [], []>} : vector<8x128xf32>, vector<128x384xf32>, vector<8x384xf32> -> vector<8x384xf32>
    %198 = vector.extract_strided_slice %196 {offsets = [0, 0], sizes = [8, 128], strides = [1, 1]} : vector<8x384xf32> to vector<8x128xf32>
    %199 = vector.extract_strided_slice %197 {offsets = [0, 0], sizes = [8, 128], strides = [1, 1]} : vector<8x384xf32> to vector<8x128xf32>
    %200 = arith.addf %198, %199 : vector<8x128xf32>
    %201 = arith.negf %200 : vector<8x128xf32>
    %202 = math.exp %201 : vector<8x128xf32>
    %cst_45 = arith.constant 1.000000e+00 : f32
    %203 = vector.broadcast %cst_45 : f32 to vector<8x128xf32>
    %204 = arith.addf %203, %202 : vector<8x128xf32>
    %205 = arith.divf %203, %204 : vector<8x128xf32>
    %206 = vector.extract_strided_slice %196 {offsets = [0, 128], sizes = [8, 128], strides = [1, 1]} : vector<8x384xf32> to vector<8x128xf32>
    %207 = vector.extract_strided_slice %197 {offsets = [0, 128], sizes = [8, 128], strides = [1, 1]} : vector<8x384xf32> to vector<8x128xf32>
    %208 = arith.addf %206, %207 : vector<8x128xf32>
    %209 = arith.negf %208 : vector<8x128xf32>
    %210 = math.exp %209 : vector<8x128xf32>
    %cst_46 = arith.constant 1.000000e+00 : f32
    %211 = vector.broadcast %cst_46 : f32 to vector<8x128xf32>
    %212 = arith.addf %211, %210 : vector<8x128xf32>
    %213 = arith.divf %211, %212 : vector<8x128xf32>
    %214 = vector.extract_strided_slice %196 {offsets = [0, 256], sizes = [8, 128], strides = [1, 1]} : vector<8x384xf32> to vector<8x128xf32>
    %215 = vector.extract_strided_slice %197 {offsets = [0, 256], sizes = [8, 128], strides = [1, 1]} : vector<8x384xf32> to vector<8x128xf32>
    %216 = arith.addf %215, %6 : vector<8x128xf32>
    %217 = arith.mulf %205, %216 : vector<8x128xf32>
    %218 = arith.addf %214, %217 : vector<8x128xf32>
    %219 = math.tanh %218 : vector<8x128xf32>
    %cst_47 = arith.constant 1.000000e+00 : f32
    %220 = vector.broadcast %cst_47 : f32 to vector<8x128xf32>
    %221 = arith.subf %220, %213 : vector<8x128xf32>
    %222 = arith.mulf %221, %219 : vector<8x128xf32>
    %223 = arith.mulf %213, %193 : vector<8x128xf32>
    %224 = arith.addf %222, %223 : vector<8x128xf32>
    %c7_i32 = arith.constant 7 : i32
    %225 = arith.index_cast %c7_i32 : i32 to index
    %c0_48 = arith.constant 0 : index
    %c0_49 = arith.constant 0 : index
    %226 = vector.load %arg1[%225, %c0_48, %c0_49] : memref<8x8x384xf32, #tpu.memory_space<vmem>>, vector<1x8x384xf32>
    %227 = vector.shape_cast %226 : vector<1x8x384xf32> to vector<8x384xf32>
    %cst_50 = arith.constant dense<0.000000e+00> : vector<8x384xf32>
    %228 = tpu.matmul %224, %3, %cst_50 {dimension_numbers = #tpu.dot_dimension_numbers<[1], [0], [0], [1], [0, 0, 1, 1], [], []>} : vector<8x128xf32>, vector<128x384xf32>, vector<8x384xf32> -> vector<8x384xf32>
    %229 = vector.extract_strided_slice %227 {offsets = [0, 0], sizes = [8, 128], strides = [1, 1]} : vector<8x384xf32> to vector<8x128xf32>
    %230 = vector.extract_strided_slice %228 {offsets = [0, 0], sizes = [8, 128], strides = [1, 1]} : vector<8x384xf32> to vector<8x128xf32>
    %231 = arith.addf %229, %230 : vector<8x128xf32>
    %232 = arith.negf %231 : vector<8x128xf32>
    %233 = math.exp %232 : vector<8x128xf32>
    %cst_51 = arith.constant 1.000000e+00 : f32
    %234 = vector.broadcast %cst_51 : f32 to vector<8x128xf32>
    %235 = arith.addf %234, %233 : vector<8x128xf32>
    %236 = arith.divf %234, %235 : vector<8x128xf32>
    %237 = vector.extract_strided_slice %227 {offsets = [0, 128], sizes = [8, 128], strides = [1, 1]} : vector<8x384xf32> to vector<8x128xf32>
    %238 = vector.extract_strided_slice %228 {offsets = [0, 128], sizes = [8, 128], strides = [1, 1]} : vector<8x384xf32> to vector<8x128xf32>
    %239 = arith.addf %237, %238 : vector<8x128xf32>
    %240 = arith.negf %239 : vector<8x128xf32>
    %241 = math.exp %240 : vector<8x128xf32>
    %cst_52 = arith.constant 1.000000e+00 : f32
    %242 = vector.broadcast %cst_52 : f32 to vector<8x128xf32>
    %243 = arith.addf %242, %241 : vector<8x128xf32>
    %244 = arith.divf %242, %243 : vector<8x128xf32>
    %245 = vector.extract_strided_slice %227 {offsets = [0, 256], sizes = [8, 128], strides = [1, 1]} : vector<8x384xf32> to vector<8x128xf32>
    %246 = vector.extract_strided_slice %228 {offsets = [0, 256], sizes = [8, 128], strides = [1, 1]} : vector<8x384xf32> to vector<8x128xf32>
    %247 = arith.addf %246, %6 : vector<8x128xf32>
    %248 = arith.mulf %236, %247 : vector<8x128xf32>
    %249 = arith.addf %245, %248 : vector<8x128xf32>
    %250 = math.tanh %249 : vector<8x128xf32>
    %cst_53 = arith.constant 1.000000e+00 : f32
    %251 = vector.broadcast %cst_53 : f32 to vector<8x128xf32>
    %252 = arith.subf %251, %244 : vector<8x128xf32>
    %253 = arith.mulf %252, %250 : vector<8x128xf32>
    %254 = arith.mulf %244, %224 : vector<8x128xf32>
    %255 = arith.addf %253, %254 : vector<8x128xf32>
    %c8_i32 = arith.constant 8 : i32
    %c0_54 = arith.constant 0 : index
    %c0_55 = arith.constant 0 : index
    %256 = vector.load %arg4[%c0_54, %c0_55] : memref<8x128xf32, #tpu.memory_space<vmem>>, vector<8x128xf32>
    tpu.vector_store %arg4[%c0_54, %c0_55], %255 {strides = array<i32>} : memref<8x128xf32, #tpu.memory_space<vmem>>, vector<8x128xf32>,
    return
  }
  func.func @transform_0(%arg0: i32) -> (i32, i32, i32) {
    %c0_i32 = arith.constant 0 : i32
    %c0_i32_0 = arith.constant 0 : i32
    %c0_i32_1 = arith.constant 0 : i32
    return %arg0, %c0_i32, %c0_i32_0 : i32, i32, i32
  }
  func.func @transform_1(%arg0: i32) -> (i32, i32) {
    %c0_i32 = arith.constant 0 : i32
    %c0_i32_0 = arith.constant 0 : i32
    %c0_i32_1 = arith.constant 0 : i32
    return %c0_i32, %c0_i32_0 : i32, i32
  }
  func.func @transform_2(%arg0: i32) -> (i32, i32) {
    %c0_i32 = arith.constant 0 : i32
    %c0_i32_0 = arith.constant 0 : i32
    %c0_i32_1 = arith.constant 0 : i32
    return %c0_i32, %c0_i32_0 : i32, i32
  }
  func.func @transform_3(%arg0: i32) -> (i32, i32) {
    %c0_i32 = arith.constant 0 : i32
    %c0_i32_0 = arith.constant 0 : i32
    %c0_i32_1 = arith.constant 0 : i32
    return %c0_i32, %c0_i32_0 : i32, i32
  }
}

</mosaic_0001>

<bundles_post_ra>
// kernel: tpu_custom_call.1
= control target key start
LH: loop header
LB: loop body
LE: loop exit
PB: predicated region body
PF: predicated region fallthrough
CT: control target
= control target key end

     0   :  { %8 = vsyncpa [#allocation3], 0  ;;  %s2934_s0 = inlined_call_operand.hbm [shape: f32[8,8,384], index: 0, kind: input, shape index: {}]   ;;  %s2935_s1 = inlined_call_operand.hbm [shape: f32[128,384], index: 1, kind: input, shape index: {}]   ;;  %s2936_s2 = inlined_call_operand.vmem [shape: f32[1,128], index: 2, kind: input, shape index: {}]   ;;  %s2937_s3 = inlined_call_operand.hbm [shape: f32[8,128], index: 3, kind: output, shape index: {}]  }
   0x1   :  { %9 = vsyncpa [#allocation6], 0 }
   0x2   :  { %10 = vsyncpa [#allocation4], 0  ;;  %s2497_s12 = smov [#allocation2]   ;;  %s2425_s16 = scalar_lea.hbm %s2934_s0, 3072 }
   0x3   :  { %s16_s13 = sshll.u32 %s2497_s12, 4  ;;  %p2426_p0 = scmp.ne.s32.totalorder %s2934_s0, %s2425_s16  ;;  %s17_s13 = int_to_ptr.vmem [resolvable:$true] %s16_s13 }
   0x4   :  { %p2429_p1 = scmp.lt.u32.totalorder %s2425_s16, %s2934_s0 }
   0x6   :  { %p2431_p2 = pnand %p2429_p1, %p2426_p0 }
   0x8   :  { %2434 = shalt.err (!%p2431_p2)
}
   0x9   :  { %s2435_s21 = scalar_lea.vmem %s17_s13, 3072  ;;  %p2440_p4 = scmp.lt.s32.totalorder %s17_s13, %s17_s13 }
   0xa   :  { %p2436_p3 = scmp.ne.s32.totalorder %s17_s13, %s2435_s21  ;;  %p2441_p5 = scmp.lt.s32.totalorder %s2435_s21, %s2435_s21 }
   0xc   :  { %p2442_p6 = por %p2441_p5, %p2440_p4 }
   0xe   :  { %p2443_p7 = pnand %p2442_p6, %p2436_p3 }
  0x10   :  { %2446 = shalt.err (!%p2443_p7)
}
  0x11   :  { %s2498_s22 = smov 384   ;;  %s2499_s23 = smov 24  }
  0x12   :  { %22 = dma.hbm_to_vmem [thread:$0]  %s2934_s0, 3072, %s17_s13, [#allocation3], %s2498_s22, %s2498_s22, %s2499_s23  }
  0x13   :  { %s2500_s26 = smov [#allocation5]   ;;  %s2447_s30 = scalar_lea.hbm %s2935_s1, 6144 }
  0x14   :  { %s28_s27 = sshll.u32 %s2500_s26, 4  ;;  %p2448_p8 = scmp.ne.s32.totalorder %s2935_s1, %s2447_s30  ;;  %s29_s27 = int_to_ptr.vmem [resolvable:$true] %s28_s27 }
  0x15   :  { %p2451_p9 = scmp.lt.u32.totalorder %s2447_s30, %s2935_s1 }
  0x17   :  { %p2453_p10 = pnand %p2451_p9, %p2448_p8 }
  0x19   :  { %2456 = shalt.err (!%p2453_p10)
}
  0x1a   :  { %s2457_s8 = scalar_lea.vmem %s29_s27, 6144  ;;  %p2462_p12 = scmp.lt.s32.totalorder %s29_s27, %s29_s27 }
  0x1b   :  { %p2458_p11 = scmp.ne.s32.totalorder %s29_s27, %s2457_s8  ;;  %p2463_p13 = scmp.lt.s32.totalorder %s2457_s8, %s2457_s8 }
  0x1d   :  { %p2464_p0 = por %p2463_p13, %p2462_p12 }
  0x1f   :  { %p2465_p1 = pnand %p2464_p0, %p2458_p11 }
  0x21   :  { %2468 = shalt.err (!%p2465_p1)
}
  0x22   :  { %34 = dma.hbm_to_vmem [thread:$0]  %s2935_s1, 6144, %s29_s27, [#allocation6], %s2498_s22, %s2498_s22, %s2499_s23  }
  0x23   :  { %2491 = dma.done.wait [#allocation3], 3072  }
  0x24   :  { %2492 = vsyncadd [#allocation3], 4294964224 }
  0x25   :  { %2493 = dma.done.wait [#allocation6], 6144  }
  0x26   :  { %2494 = vsyncadd [#allocation6], 4294961152  ;;  %v2501_v0 = vmov 0.0|0.0   ;;  %v2502_v1 = vmov 0.0   ;;  %vm2503_vm0 = vmmov 0   ;;  %v49_v2 = vld [vmem:[#allocation5 + $0x8] sm:$0xff] }
  0x27   :  { %1921 = vmatprep.subr.bf16.mxu1 %v2501_v0  ;;  %171 = vmatprep.mubr.f32.mxu0 %v2502_v1  ;;  %v52_v3 = vld [vmem:[#allocation5 + $0x20] sm:$0xff]  ;;  %v51_v6 = vld [vmem:[#allocation5 + $0x18] sm:$0xff]  ;;  %v58_v8 = vld [vmem:[#allocation5 + $0x50] sm:$0xff] }
  0x28   :  { %1641 = vmatprep.mubr.msk.f32.mxu1 %vm2503_vm0, %v2502_v1  ;;  %v48_v4 = vld [vmem:[#allocation5] sm:$0xff]  ;;  %v2553_v5 = vpack.c.bf16 %v52_v3, %v49_v2  ;;  %v55_v7 = vld [vmem:[#allocation5 + $0x38] sm:$0xff]  ;;  %v54_v11 = vld [vmem:[#allocation5 + $0x30] sm:$0xff] }
  0x29   :  { %v2555_v9 = vpack.c.bf16 %v51_v6, %v48_v4  ;;  %v2557_v10 = vpack.c.bf16 %v58_v8, %v55_v7  ;;  %v57_v12 = vld [vmem:[#allocation5 + $0x48] sm:$0xff]  ;;  %v64_v14 = vld [vmem:[#allocation5 + $0x80] sm:$0xff]  ;;  %v63_v18 = vld [vmem:[#allocation5 + $0x78] sm:$0xff] }
  0x2a   :  { %v61_v13 = vld [vmem:[#allocation5 + $0x68] sm:$0xff]  ;;  %1890 = vmatprep.subr.bf16.mxu0 %v2553_v5  ;;  %v2561_v15 = vpack.c.bf16 %v57_v12, %v54_v11  ;;  %v60_v17 = vld [vmem:[#allocation5 + $0x60] sm:$0xff]  ;;  %v67_v19 = vld [vmem:[#allocation5 + $0x98] sm:$0xff] }
  0x2b   :  { %1892 = vmatpush1.bf16.msra.mxu0 %v2555_v9  ;;  %v2564_v16 = vpack.c.bf16 %v64_v14, %v61_v13  ;;  %v70_v20 = vld [vmem:[#allocation5 + $0xb0] sm:$0xff]  ;;  %v2567_v21 = vpack.c.bf16 %v63_v18, %v60_v17  ;;  %v69_v24 = vld [vmem:[#allocation5 + $0xa8] sm:$0xff]  ;;  %v76_v28 = vld [vmem:[#allocation5 + $0xe0] sm:$0xff] }
  0x2c   :  { %1894 = vmatprep.subr.bf16.mxu0 %v2557_v10  ;;  %v66_v22 = vld [vmem:[#allocation5 + $0x90] sm:$0xff]  ;;  %v2570_v23 = vpack.c.bf16 %v70_v20, %v67_v19  ;;  %v53_v26 = vld [vmem:[#allocation5 + $0x28] sm:$0xff]  ;;  %v56_v30 = vld [vmem:[#allocation5 + $0x40] sm:$0xff] }
  0x2d   :  { %v50_v25 = vld [vmem:[#allocation5 + $0x10] sm:$0xff]  ;;  %v73_v27 = vld [vmem:[#allocation5 + $0xc8] sm:$0xff]  ;;  %v59_v31 = vld [vmem:[#allocation5 + $0x58] sm:$0xff]  ;;  %v2575_v32 = vpack.c.bf16 %v69_v24, %v66_v22 }
  0x2e   :  { %v2572_v29 = vpack.c.bf16 %v53_v26, %v50_v25  ;;  %v72_v33 = vld [vmem:[#allocation5 + $0xc0] sm:$0xff]  ;;  %v2578_v34 = vpack.c.bf16 %v59_v31, %v56_v30  ;;  %v2581_v35 = vpack.c.bf16 %v76_v28, %v73_v27  ;;  %v75_v36 = vld [vmem:[#allocation5 + $0xd8] sm:$0xff]  ;;  %v62_v37 = vld [vmem:[#allocation5 + $0x70] sm:$0xff] }
  0x2f   :  { %1896 = vmatpush1.bf16.msra.mxu0 %v2561_v15  ;;  %v65_v38 = vld [vmem:[#allocation5 + $0x88] sm:$0xff]  ;;  %v79_v39 = vld [vmem:[#allocation5 + $0xf8] sm:$0xff]  ;;  %v82_v40 = vld [vmem:[#allocation5 + $0x110] sm:$0xff]  ;;  %v2585_v41 = vpack.c.bf16 %v75_v36, %v72_v33 }
  0x30   :  { %1898 = vmatprep.subr.bf16.mxu0 %v2564_v16  ;;  %1923 = vmatpush3.bf16.msra.mxu1 %v2572_v29  ;;  %v78_v42 = vld [vmem:[#allocation5 + $0xf0] sm:$0xff]  ;;  %v2588_v43 = vpack.c.bf16 %v65_v38, %v62_v37  ;;  %v2591_v44 = vpack.c.bf16 %v82_v40, %v79_v39  ;;  %v81_v45 = vld [vmem:[#allocation5 + $0x108] sm:$0xff]  ;;  %v68_v46 = vld [vmem:[#allocation5 + $0xa0] sm:$0xff] }
  0x31   :  { %1924 = vmatprep.subr.bf16.mxu1 %v2501_v0  ;;  %v71_v47 = vld [vmem:[#allocation5 + $0xb8] sm:$0xff]  ;;  %v85_v48 = vld [vmem:[#allocation5 + $0x128] sm:$0xff]  ;;  %v88_v49 = vld [vmem:[#allocation5 + $0x140] sm:$0xff]  ;;  %v2595_v50 = vpack.c.bf16 %v81_v45, %v78_v42 }
  0x32   :  { %v84_v51 = vld [vmem:[#allocation5 + $0x120] sm:$0xff]  ;;  %v2598_v52 = vpack.c.bf16 %v71_v47, %v68_v46  ;;  %v2601_v53 = vpack.c.bf16 %v88_v49, %v85_v48  ;;  %v87_v54 = vld [vmem:[#allocation5 + $0x138] sm:$0xff]  ;;  %v74_v55 = vld [vmem:[#allocation5 + $0xd0] sm:$0xff] }
  0x33   :  { %1900 = vmatpush1.bf16.msra.mxu0 %v2567_v21  ;;  %v77_v56 = vld [vmem:[#allocation5 + $0xe8] sm:$0xff]  ;;  %v91_v57 = vld [vmem:[#allocation5 + $0x158] sm:$0xff]  ;;  %v94_v58 = vld [vmem:[#allocation5 + $0x170] sm:$0xff]  ;;  %v2605_v59 = vpack.c.bf16 %v87_v54, %v84_v51 }
  0x34   :  { %1902 = vmatprep.subr.bf16.mxu0 %v2570_v23  ;;  %1926 = vmatpush3.bf16.msra.mxu1 %v2578_v34  ;;  %v90_v60 = vld [vmem:[#allocation5 + $0x150] sm:$0xff]  ;;  %v2608_v61 = vpack.c.bf16 %v77_v56, %v74_v55  ;;  %v2611_v62 = vpack.c.bf16 %v94_v58, %v91_v57  ;;  %v93_v63 = vld [vmem:[#allocation5 + $0x168] sm:$0xff]  ;;  %v80_v2 = vld [vmem:[#allocation5 + $0x100] sm:$0xff] }
  0x35   :  { %1927 = vmatprep.subr.bf16.mxu1 %v2501_v0  ;;  %v83_v3 = vld [vmem:[#allocation5 + $0x118] sm:$0xff]  ;;  %v2615_v4 = vpack.c.bf16 %v93_v63, %v90_v60  ;;  %v86_v7 = vld [vmem:[#allocation5 + $0x130] sm:$0xff]  ;;  %v89_v8 = vld [vmem:[#allocation5 + $0x148] sm:$0xff] }
  0x36   :  { %v2618_v6 = vpack.c.bf16 %v83_v3, %v80_v2  ;;  %v2624_v11 = vpack.c.bf16 %v89_v8, %v86_v7  ;;  %v92_v12 = vld [vmem:[#allocation5 + $0x160] sm:$0xff]  ;;  %v95_v13 = vld [vmem:[#allocation5 + $0x178] sm:$0xff]  ;;  %v105_v20 = vld [vmem:[#allocation2 + $0x8] sm:$0xff] }
  0x37   :  { %1904 = vmatpush1.bf16.msra.mxu0 %v2575_v32  ;;  %v2630_v14 = vpack.c.bf16 %v95_v13, %v92_v12  ;;  %v104_v17 = vld [vmem:[#allocation2] sm:$0xff]  ;;  %v106_v40 = vld [vmem:[#allocation2 + $0x10] sm:$0xff]  ;;  %v271_v55 = vld [vmem:[#allocation2 + $0x18] sm:$0xff] }
  0x38   :  { %1906 = vmatprep.subr.bf16.mxu0 %v2581_v35  ;;  %1929 = vmatpush3.bf16.msra.mxu1 %v2588_v43  ;;  %v2674_v36 = vld [vmem:[%s2936_s2] ss:$0 sm:$0xff]  ;;  %s2504_s2 = smov [#allocation7]  }
  0x39   :  { %1930 = vmatprep.subr.bf16.mxu1 %v2501_v0  ;;  %v272_v60 = vld [vmem:[#allocation2 + $0x20] sm:$0xff]  ;;  %s1446_s11 = sshll.u32 %s2504_s2, 4  ;;  %s1447_s11 = int_to_ptr.vmem [resolvable:$true] %s1446_s11 }
  0x3a   :  { %s2469_s12 = scalar_lea.vmem %s1447_s11, 128  ;;  %p2474_p3 = scmp.lt.s32.totalorder %s1447_s11, %s1447_s11 }
  0x3b   :  { %1908 = vmatpush1.bf16.msra.mxu0 %v2585_v41  ;;  %p2470_p2 = scmp.ne.s32.totalorder %s1447_s11, %s2469_s12  ;;  %p2475_p4 = scmp.lt.s32.totalorder %s2469_s12, %s2469_s12 }
  0x3c   :  { %1910 = vmatprep.subr.bf16.mxu0 %v2591_v44  ;;  %1932 = vmatpush3.bf16.msra.mxu1 %v2598_v52 }
  0x3d   :  { %1933 = vmatprep.subr.bf16.mxu1 %v2501_v0  ;;  %p2476_p5 = por %p2475_p4, %p2474_p3 }
  0x3f   :  { %1912 = vmatpush1.bf16.msra.mxu0 %v2595_v50  ;;  %p2477_p6 = pnand %p2476_p5, %p2470_p2 }
  0x40   :  { %1914 = vmatprep.subr.bf16.mxu0 %v2601_v53  ;;  %1935 = vmatpush3.bf16.msra.mxu1 %v2608_v61 }
  0x41   :  { %1936 = vmatprep.subr.bf16.mxu1 %v2501_v0 }
  0x43   :  { %1916 = vmatpush1.bf16.msra.mxu0 %v2605_v59 }
  0x44   :  { %1918 = vmatprep.subr.bf16.mxu0 %v2611_v62  ;;  %1938 = vmatpush3.bf16.msra.mxu1 %v2618_v6 }
  0x45   :  { %1939 = vmatprep.subr.bf16.mxu1 %v2501_v0 }
  0x47   :  { %1920 = vmatpush1.bf16.msra.mxu0 %v2615_v4 }
  0x48   :  { %1946 = vmatprep.subr.bf16.mxu0 %v2553_v5  ;;  %1941 = vmatpush3.bf16.msra.mxu1 %v2624_v11 }
  0x49   :  { %1942 = vmatprep.subr.bf16.mxu1 %v2501_v0 }
  0x4a   :  { %172 = vmatmul.mubr.f32.vlgmr.msra.gmra.mrb[0].mxu0 %v2502_v1 }
  0x4b   :  { %1948 = vmatpush1.bf16.msra.mxu0 %v2555_v9  ;;  %338 = vmatprep.mubr.f32.mxu0 %v2502_v1 }
  0x4c   :  { %1950 = vmatprep.subr.bf16.mxu0 %v2557_v10  ;;  %1944 = vmatpush3.bf16.msra.mxu1 %v2630_v14 }
  0x4d   :  { %1977 = vmatprep.subr.bf16.mxu1 %v2501_v0 }
  0x4f   :  { %1952 = vmatpush1.bf16.msra.mxu0 %v2561_v15  ;;  %1642 = vmatmul.mubr.f32.vlgmr.msra.gmra.mrb[0].mxu1 %v2502_v1 }
  0x50   :  { %1954 = vmatprep.subr.bf16.mxu0 %v2564_v16  ;;  %1979 = vmatpush3.bf16.msra.mxu1 %v2572_v29 }
  0x51   :  { %1980 = vmatprep.subr.bf16.mxu1 %v2501_v0  ;;  %1676 = vmatprep.mubr.msk.f32.mxu1 %vm2503_vm0, %v2502_v1 }
  0x53   :  { %1956 = vmatpush1.bf16.msra.mxu0 %v2567_v21 }
  0x54   :  { %1958 = vmatprep.subr.bf16.mxu0 %v2570_v23  ;;  %1982 = vmatpush3.bf16.msra.mxu1 %v2578_v34 }
  0x55   :  { %1983 = vmatprep.subr.bf16.mxu1 %v2501_v0 }
  0x57   :  { %1960 = vmatpush1.bf16.msra.mxu0 %v2575_v32 }
  0x58   :  { %1962 = vmatprep.subr.bf16.mxu0 %v2581_v35  ;;  %1985 = vmatpush3.bf16.msra.mxu1 %v2588_v43 }
  0x59   :  { %1986 = vmatprep.subr.bf16.mxu1 %v2501_v0 }
  0x5b   :  { %1964 = vmatpush1.bf16.msra.mxu0 %v2585_v41 }
  0x5c   :  { %1966 = vmatprep.subr.bf16.mxu0 %v2591_v44  ;;  %1988 = vmatpush3.bf16.msra.mxu1 %v2598_v52 }
  0x5d   :  { %1989 = vmatprep.subr.bf16.mxu1 %v2501_v0 }
  0x5f   :  { %1968 = vmatpush1.bf16.msra.mxu0 %v2595_v50 }
  0x60   :  { %1970 = vmatprep.subr.bf16.mxu0 %v2601_v53  ;;  %1991 = vmatpush3.bf16.msra.mxu1 %v2608_v61 }
  0x61   :  { %1992 = vmatprep.subr.bf16.mxu1 %v2501_v0 }
  0x63   :  { %1972 = vmatpush1.bf16.msra.mxu0 %v2605_v59 }
  0x64   :  { %1974 = vmatprep.subr.bf16.mxu0 %v2611_v62  ;;  %1994 = vmatpush3.bf16.msra.mxu1 %v2618_v6 }
  0x65   :  { %1995 = vmatprep.subr.bf16.mxu1 %v2501_v0 }
  0x67   :  { %1976 = vmatpush1.bf16.msra.mxu0 %v2615_v4 }
  0x68   :  { %2002 = vmatprep.subr.bf16.mxu0 %v2553_v5  ;;  %1997 = vmatpush3.bf16.msra.mxu1 %v2624_v11 }
  0x69   :  { %1998 = vmatprep.subr.bf16.mxu1 %v2501_v0 }
  0x6c   :  { %2000 = vmatpush3.bf16.msra.mxu1 %v2630_v14 }
  0x6d   :  { %2033 = vmatprep.subr.bf16.mxu1 %v2501_v0 }
 0x11d   :  { %v173_v18 = vpop.f32.mrb[0].mxu0 }
 0x11e   :  { %v248_v19 = vadd.f32 %v173_v18, %v104_v17  ;;  %v175_v22 = vpop.f32.mrb[1].mxu0 }
 0x11f   :  { %v255_v25 = vadd.f32 %v175_v22, %v105_v20  ;;  %v273_v22 = vld [vmem:[#allocation2 + $0x28] sm:$0xff] }
 0x120   :  { %v1457_v24 = vmul.f32 -1.442695, %v248_v19 }
 0x121   :  { %v1458_v26 = vmul.f32 -1.442695, %v255_v25 }
 0x122   :  { %2345 = vpow2.f32 %v1457_v24  ;;  %v244_v27 = vpop.f32.mrb[0].mxu1 }
 0x123   :  { %v1643_v28 = vpop.f32.mrb[1].mxu1  ;;  %2347 = vpow2.f32 %v1458_v26  ;;  %v262_v38 = vadd.f32 %v2674_v36, %v244_v27 }
 0x12c   :  { %v2346_v30 = vpop.eup %2345 }
 0x12d   :  { %v252_v31 = vadd.f32 1.0, %v2346_v30  ;;  %v2348_v33 = vpop.eup %2347 }
 0x12e   :  { %v259_v37 = vadd.f32 1.0, %v2348_v33 }
 0x12f   :  { %2349 = vrcp.f32 %v252_v31 }
 0x130   :  { %2351 = vrcp.f32 %v259_v37  ;;  %v438_v37 = vld [vmem:[#allocation2 + $0x30] sm:$0xff] }
 0x139   :  { %v2350_v39 = vpop.eup %2349 }
 0x13a   :  { %v263_v42 = vmul.f32 %v2350_v39, %v262_v38  ;;  %v2352_v46 = vpop.eup %2351 }
 0x13b   :  { %v266_v47 = vsub.f32 1.0, %v2352_v46  ;;  %v268_v51 = vmul.f32 0.0, %v2352_v46 }
 0x13c   :  { %v264_v45 = vadd.f32 %v263_v42, %v106_v40  ;;  %v439_v42 = vld [vmem:[#allocation2 + $0x38] sm:$0xff] }
 0x13e   :  { %2353 = vtanh.f32 %v264_v45 }
 0x148   :  { %v2354_v48 = vpop.eup %2353 }
 0x149   :  { %v267_v49 = vmul.f32 %v2354_v48, %v266_v47 }
 0x14b   :  { %v2677_v54 = vadd.f32 %v268_v51, %v267_v49 }
 0x14d   :  { %339 = vmatmul.mubr.f32.vlgmr.msra.gmra.mrb[2].mxu0 %v2677_v54  ;;  %1677 = vmatmul.mubr.f32.vlgmr.msra.gmra.mrb[2].mxu1 %v2677_v54 }
 0x14e   :  { %2004 = vmatpush1.bf16.msra.mxu0 %v2555_v9  ;;  %2035 = vmatpush3.bf16.msra.mxu1 %v2572_v29 }
 0x14f   :  { %2006 = vmatprep.subr.bf16.mxu0 %v2557_v10  ;;  %2036 = vmatprep.subr.bf16.mxu1 %v2501_v0 }
 0x150   :  { %505 = vmatprep.mubr.f32.mxu0 %v2502_v1  ;;  %1711 = vmatprep.mubr.msk.f32.mxu1 %vm2503_vm0, %v2502_v1 }
 0x152   :  { %2008 = vmatpush1.bf16.msra.mxu0 %v2561_v15  ;;  %2038 = vmatpush3.bf16.msra.mxu1 %v2578_v34 }
 0x153   :  { %2010 = vmatprep.subr.bf16.mxu0 %v2564_v16  ;;  %2039 = vmatprep.subr.bf16.mxu1 %v2501_v0 }
 0x156   :  { %2012 = vmatpush1.bf16.msra.mxu0 %v2567_v21  ;;  %2041 = vmatpush3.bf16.msra.mxu1 %v2588_v43 }
 0x157   :  { %2014 = vmatprep.subr.bf16.mxu0 %v2570_v23  ;;  %2042 = vmatprep.subr.bf16.mxu1 %v2501_v0 }
 0x15a   :  { %2016 = vmatpush1.bf16.msra.mxu0 %v2575_v32  ;;  %2044 = vmatpush3.bf16.msra.mxu1 %v2598_v52 }
 0x15b   :  { %2018 = vmatprep.subr.bf16.mxu0 %v2581_v35  ;;  %2045 = vmatprep.subr.bf16.mxu1 %v2501_v0 }
 0x15e   :  { %2020 = vmatpush1.bf16.msra.mxu0 %v2585_v41  ;;  %2047 = vmatpush3.bf16.msra.mxu1 %v2608_v61 }
 0x15f   :  { %2022 = vmatprep.subr.bf16.mxu0 %v2591_v44  ;;  %2048 = vmatprep.subr.bf16.mxu1 %v2501_v0 }
 0x162   :  { %2024 = vmatpush1.bf16.msra.mxu0 %v2595_v50  ;;  %2050 = vmatpush3.bf16.msra.mxu1 %v2618_v6 }
 0x163   :  { %2026 = vmatprep.subr.bf16.mxu0 %v2601_v53  ;;  %2051 = vmatprep.subr.bf16.mxu1 %v2501_v0 }
 0x166   :  { %2028 = vmatpush1.bf16.msra.mxu0 %v2605_v59  ;;  %2053 = vmatpush3.bf16.msra.mxu1 %v2624_v11 }
 0x167   :  { %2030 = vmatprep.subr.bf16.mxu0 %v2611_v62  ;;  %2054 = vmatprep.subr.bf16.mxu1 %v2501_v0 }
 0x16a   :  { %2032 = vmatpush1.bf16.msra.mxu0 %v2615_v4  ;;  %2056 = vmatpush3.bf16.msra.mxu1 %v2630_v14 }
 0x16b   :  { %2058 = vmatprep.subr.bf16.mxu0 %v2553_v5  ;;  %2089 = vmatprep.subr.bf16.mxu1 %v2501_v0 }
 0x220   :  { %v340_v56 = vpop.f32.mrb[2].mxu0  ;;  %v411_v57 = vpop.f32.mrb[2].mxu1 }
 0x221   :  { %v415_v58 = vadd.f32 %v340_v56, %v271_v55  ;;  %v342_v63 = vpop.f32.mrb[3].mxu0  ;;  %v1678_v2 = vpop.f32.mrb[3].mxu1  ;;  %v429_v19 = vadd.f32 %v2674_v36, %v411_v57 }
 0x222   :  { %v422_v7 = vadd.f32 %v342_v63, %v272_v60  ;;  %v440_v60 = vld [vmem:[#allocation2 + $0x40] sm:$0xff] }
 0x223   :  { %v1459_v3 = vmul.f32 -1.442695, %v415_v58 }
 0x224   :  { %v1460_v8 = vmul.f32 -1.442695, %v422_v7 }
 0x225   :  { %2355 = vpow2.f32 %v1459_v3 }
 0x226   :  { %2357 = vpow2.f32 %v1460_v8 }
 0x22f   :  { %v2356_v12 = vpop.eup %2355 }
 0x230   :  { %v419_v13 = vadd.f32 1.0, %v2356_v12  ;;  %v2358_v17 = vpop.eup %2357 }
 0x231   :  { %v426_v18 = vadd.f32 1.0, %v2358_v17 }
 0x232   :  { %2359 = vrcp.f32 %v419_v13 }
 0x233   :  { %2361 = vrcp.f32 %v426_v18  ;;  %v605_v18 = vld [vmem:[#allocation2 + $0x48] sm:$0xff] }
 0x23c   :  { %v2360_v20 = vpop.eup %2359 }
 0x23d   :  { %v430_v24 = vmul.f32 %v2360_v20, %v429_v19  ;;  %v2362_v26 = vpop.eup %2361 }
 0x23e   :  { %v433_v27 = vsub.f32 1.0, %v2362_v26  ;;  %v435_v31 = vmul.f32 %v2362_v26, %v2677_v54 }
 0x23f   :  { %v431_v25 = vadd.f32 %v430_v24, %v273_v22  ;;  %v606_v24 = vld [vmem:[#allocation2 + $0x50] sm:$0xff] }
 0x241   :  { %2363 = vtanh.f32 %v431_v25 }
 0x24b   :  { %v2364_v28 = vpop.eup %2363 }
 0x24c   :  { %v434_v30 = vmul.f32 %v2364_v28, %v433_v27 }
 0x24e   :  { %v2718_v33 = vadd.f32 %v435_v31, %v434_v30 }
 0x250   :  { %506 = vmatmul.mubr.f32.vlgmr.msra.gmra.mrb[4].mxu0 %v2718_v33  ;;  %1712 = vmatmul.mubr.f32.vlgmr.msra.gmra.mrb[4].mxu1 %v2718_v33 }
 0x251   :  { %2060 = vmatpush1.bf16.msra.mxu0 %v2555_v9  ;;  %2091 = vmatpush3.bf16.msra.mxu1 %v2572_v29 }
 0x252   :  { %2062 = vmatprep.subr.bf16.mxu0 %v2557_v10  ;;  %2092 = vmatprep.subr.bf16.mxu1 %v2501_v0 }
 0x253   :  { %672 = vmatprep.mubr.f32.mxu0 %v2502_v1  ;;  %1746 = vmatprep.mubr.msk.f32.mxu1 %vm2503_vm0, %v2502_v1 }
 0x255   :  { %2064 = vmatpush1.bf16.msra.mxu0 %v2561_v15  ;;  %2094 = vmatpush3.bf16.msra.mxu1 %v2578_v34 }
 0x256   :  { %2066 = vmatprep.subr.bf16.mxu0 %v2564_v16  ;;  %2095 = vmatprep.subr.bf16.mxu1 %v2501_v0 }
 0x259   :  { %2068 = vmatpush1.bf16.msra.mxu0 %v2567_v21  ;;  %2097 = vmatpush3.bf16.msra.mxu1 %v2588_v43 }
 0x25a   :  { %2070 = vmatprep.subr.bf16.mxu0 %v2570_v23  ;;  %2098 = vmatprep.subr.bf16.mxu1 %v2501_v0 }
 0x25d   :  { %2072 = vmatpush1.bf16.msra.mxu0 %v2575_v32  ;;  %2100 = vmatpush3.bf16.msra.mxu1 %v2598_v52 }
 0x25e   :  { %2074 = vmatprep.subr.bf16.mxu0 %v2581_v35  ;;  %2101 = vmatprep.subr.bf16.mxu1 %v2501_v0 }
 0x261   :  { %2076 = vmatpush1.bf16.msra.mxu0 %v2585_v41  ;;  %2103 = vmatpush3.bf16.msra.mxu1 %v2608_v61 }
 0x262   :  { %2078 = vmatprep.subr.bf16.mxu0 %v2591_v44  ;;  %2104 = vmatprep.subr.bf16.mxu1 %v2501_v0 }
 0x265   :  { %2080 = vmatpush1.bf16.msra.mxu0 %v2595_v50  ;;  %2106 = vmatpush3.bf16.msra.mxu1 %v2618_v6 }
 0x266   :  { %2082 = vmatprep.subr.bf16.mxu0 %v2601_v53  ;;  %2107 = vmatprep.subr.bf16.mxu1 %v2501_v0 }
 0x269   :  { %2084 = vmatpush1.bf16.msra.mxu0 %v2605_v59  ;;  %2109 = vmatpush3.bf16.msra.mxu1 %v2624_v11 }
 0x26a   :  { %2086 = vmatprep.subr.bf16.mxu0 %v2611_v62  ;;  %2110 = vmatprep.subr.bf16.mxu1 %v2501_v0 }
 0x26d   :  { %2088 = vmatpush1.bf16.msra.mxu0 %v2615_v4  ;;  %2112 = vmatpush3.bf16.msra.mxu1 %v2630_v14 }
 0x26e   :  { %2114 = vmatprep.subr.bf16.mxu0 %v2553_v5  ;;  %2145 = vmatprep.subr.bf16.mxu1 %v2501_v0 }
 0x323   :  { %v507_v38 = vpop.f32.mrb[4].mxu0  ;;  %v578_v39 = vpop.f32.mrb[4].mxu1 }
 0x324   :  { %v582_v40 = vadd.f32 %v507_v38, %v438_v37  ;;  %v509_v45 = vpop.f32.mrb[5].mxu0  ;;  %v1713_v46 = vpop.f32.mrb[5].mxu1  ;;  %v596_v57 = vadd.f32 %v2674_v36, %v578_v39 }
 0x325   :  { %v589_v48 = vadd.f32 %v509_v45, %v439_v42  ;;  %v607_v42 = vld [vmem:[#allocation2 + $0x58] sm:$0xff] }
 0x326   :  { %v1461_v47 = vmul.f32 -1.442695, %v582_v40 }
 0x327   :  { %v1462_v49 = vmul.f32 -1.442695, %v589_v48 }
 0x328   :  { %2365 = vpow2.f32 %v1461_v47 }
 0x329   :  { %2367 = vpow2.f32 %v1462_v49 }
 0x332   :  { %v2366_v51 = vpop.eup %2365 }
 0x333   :  { %v586_v54 = vadd.f32 1.0, %v2366_v51  ;;  %v2368_v55 = vpop.eup %2367 }
 0x334   :  { %v593_v56 = vadd.f32 1.0, %v2368_v55 }
 0x335   :  { %2369 = vrcp.f32 %v586_v54 }
 0x336   :  { %2371 = vrcp.f32 %v593_v56  ;;  %v772_v56 = vld [vmem:[#allocation2 + $0x60] sm:$0xff] }
 0x33f   :  { %v2370_v58 = vpop.eup %2369 }
 0x340   :  { %v597_v63 = vmul.f32 %v2370_v58, %v596_v57  ;;  %v2372_v3 = vpop.eup %2371 }
 0x341   :  { %v600_v7 = vsub.f32 1.0, %v2372_v3  ;;  %v602_v13 = vmul.f32 %v2372_v3, %v2718_v33 }
 0x342   :  { %v598_v2 = vadd.f32 %v597_v63, %v440_v60  ;;  %v773_v63 = vld [vmem:[#allocation2 + $0x68] sm:$0xff] }
 0x344   :  { %2373 = vtanh.f32 %v598_v2 }
 0x34e   :  { %v2374_v8 = vpop.eup %2373 }
 0x34f   :  { %v601_v12 = vmul.f32 %v2374_v8, %v600_v7 }
 0x351   :  { %v2759_v17 = vadd.f32 %v602_v13, %v601_v12 }
 0x353   :  { %673 = vmatmul.mubr.f32.vlgmr.msra.gmra.mrb[6].mxu0 %v2759_v17  ;;  %1747 = vmatmul.mubr.f32.vlgmr.msra.gmra.mrb[6].mxu1 %v2759_v17 }
 0x354   :  { %2116 = vmatpush1.bf16.msra.mxu0 %v2555_v9  ;;  %2147 = vmatpush3.bf16.msra.mxu1 %v2572_v29 }
 0x355   :  { %2118 = vmatprep.subr.bf16.mxu0 %v2557_v10  ;;  %2148 = vmatprep.subr.bf16.mxu1 %v2501_v0 }
 0x356   :  { %839 = vmatprep.mubr.f32.mxu0 %v2502_v1  ;;  %1781 = vmatprep.mubr.msk.f32.mxu1 %vm2503_vm0, %v2502_v1 }
 0x358   :  { %2120 = vmatpush1.bf16.msra.mxu0 %v2561_v15  ;;  %2150 = vmatpush3.bf16.msra.mxu1 %v2578_v34 }
 0x359   :  { %2122 = vmatprep.subr.bf16.mxu0 %v2564_v16  ;;  %2151 = vmatprep.subr.bf16.mxu1 %v2501_v0 }
 0x35c   :  { %2124 = vmatpush1.bf16.msra.mxu0 %v2567_v21  ;;  %2153 = vmatpush3.bf16.msra.mxu1 %v2588_v43 }
 0x35d   :  { %2126 = vmatprep.subr.bf16.mxu0 %v2570_v23  ;;  %2154 = vmatprep.subr.bf16.mxu1 %v2501_v0 }
 0x360   :  { %2128 = vmatpush1.bf16.msra.mxu0 %v2575_v32  ;;  %2156 = vmatpush3.bf16.msra.mxu1 %v2598_v52 }
 0x361   :  { %2130 = vmatprep.subr.bf16.mxu0 %v2581_v35  ;;  %2157 = vmatprep.subr.bf16.mxu1 %v2501_v0 }
 0x364   :  { %2132 = vmatpush1.bf16.msra.mxu0 %v2585_v41  ;;  %2159 = vmatpush3.bf16.msra.mxu1 %v2608_v61 }
 0x365   :  { %2134 = vmatprep.subr.bf16.mxu0 %v2591_v44  ;;  %2160 = vmatprep.subr.bf16.mxu1 %v2501_v0 }
 0x368   :  { %2136 = vmatpush1.bf16.msra.mxu0 %v2595_v50  ;;  %2162 = vmatpush3.bf16.msra.mxu1 %v2618_v6 }
 0x369   :  { %2138 = vmatprep.subr.bf16.mxu0 %v2601_v53  ;;  %2163 = vmatprep.subr.bf16.mxu1 %v2501_v0 }
 0x36c   :  { %2140 = vmatpush1.bf16.msra.mxu0 %v2605_v59  ;;  %2165 = vmatpush3.bf16.msra.mxu1 %v2624_v11 }
 0x36d   :  { %2142 = vmatprep.subr.bf16.mxu0 %v2611_v62  ;;  %2166 = vmatprep.subr.bf16.mxu1 %v2501_v0 }
 0x370   :  { %2144 = vmatpush1.bf16.msra.mxu0 %v2615_v4  ;;  %2168 = vmatpush3.bf16.msra.mxu1 %v2630_v14 }
 0x371   :  { %2170 = vmatprep.subr.bf16.mxu0 %v2553_v5  ;;  %2201 = vmatprep.subr.bf16.mxu1 %v2501_v0 }
 0x426   :  { %v674_v19 = vpop.f32.mrb[6].mxu0  ;;  %v745_v20 = vpop.f32.mrb[6].mxu1 }
 0x427   :  { %v749_v22 = vadd.f32 %v674_v19, %v605_v18  ;;  %v676_v25 = vpop.f32.mrb[7].mxu0  ;;  %v1748_v26 = vpop.f32.mrb[7].mxu1  ;;  %v763_v39 = vadd.f32 %v2674_v36, %v745_v20 }
 0x428   :  { %v756_v28 = vadd.f32 %v676_v25, %v606_v24  ;;  %v774_v24 = vld [vmem:[#allocation2 + $0x70] sm:$0xff] }
 0x429   :  { %v1463_v27 = vmul.f32 -1.442695, %v749_v22 }
 0x42a   :  { %v1464_v30 = vmul.f32 -1.442695, %v756_v28 }
 0x42b   :  { %2375 = vpow2.f32 %v1463_v27 }
 0x42c   :  { %2377 = vpow2.f32 %v1464_v30 }
 0x435   :  { %v2376_v31 = vpop.eup %2375 }
 0x436   :  { %v753_v33 = vadd.f32 1.0, %v2376_v31  ;;  %v2378_v37 = vpop.eup %2377 }
 0x437   :  { %v760_v38 = vadd.f32 1.0, %v2378_v37 }
 0x438   :  { %2379 = vrcp.f32 %v753_v33 }
 0x439   :  { %2381 = vrcp.f32 %v760_v38  ;;  %v939_v38 = vld [vmem:[#allocation2 + $0x78] sm:$0xff] }
 0x442   :  { %v2380_v40 = vpop.eup %2379 }
 0x443   :  { %v764_v45 = vmul.f32 %v2380_v40, %v763_v39  ;;  %v2382_v47 = vpop.eup %2381 }
 0x444   :  { %v767_v48 = vsub.f32 1.0, %v2382_v47  ;;  %v769_v54 = vmul.f32 %v2382_v47, %v2759_v17 }
 0x445   :  { %v765_v46 = vadd.f32 %v764_v45, %v607_v42  ;;  %v940_v45 = vld [vmem:[#allocation2 + $0x80] sm:$0xff] }
 0x447   :  { %2383 = vtanh.f32 %v765_v46 }
 0x451   :  { %v2384_v49 = vpop.eup %2383 }
 0x452   :  { %v768_v51 = vmul.f32 %v2384_v49, %v767_v48 }
 0x454   :  { %v2800_v55 = vadd.f32 %v769_v54, %v768_v51 }
 0x456   :  { %840 = vmatmul.mubr.f32.vlgmr.msra.gmra.mrb[8].mxu0 %v2800_v55  ;;  %1782 = vmatmul.mubr.f32.vlgmr.msra.gmra.mrb[8].mxu1 %v2800_v55 }
 0x457   :  { %2172 = vmatpush1.bf16.msra.mxu0 %v2555_v9  ;;  %2203 = vmatpush3.bf16.msra.mxu1 %v2572_v29 }
 0x458   :  { %2174 = vmatprep.subr.bf16.mxu0 %v2557_v10  ;;  %2204 = vmatprep.subr.bf16.mxu1 %v2501_v0 }
 0x459   :  { %1006 = vmatprep.mubr.f32.mxu0 %v2502_v1  ;;  %1816 = vmatprep.mubr.msk.f32.mxu1 %vm2503_vm0, %v2502_v1 }
 0x45b   :  { %2176 = vmatpush1.bf16.msra.mxu0 %v2561_v15  ;;  %2206 = vmatpush3.bf16.msra.mxu1 %v2578_v34 }
 0x45c   :  { %2178 = vmatprep.subr.bf16.mxu0 %v2564_v16  ;;  %2207 = vmatprep.subr.bf16.mxu1 %v2501_v0 }
 0x45f   :  { %2180 = vmatpush1.bf16.msra.mxu0 %v2567_v21  ;;  %2209 = vmatpush3.bf16.msra.mxu1 %v2588_v43 }
 0x460   :  { %2182 = vmatprep.subr.bf16.mxu0 %v2570_v23  ;;  %2210 = vmatprep.subr.bf16.mxu1 %v2501_v0 }
 0x463   :  { %2184 = vmatpush1.bf16.msra.mxu0 %v2575_v32  ;;  %2212 = vmatpush3.bf16.msra.mxu1 %v2598_v52 }
 0x464   :  { %2186 = vmatprep.subr.bf16.mxu0 %v2581_v35  ;;  %2213 = vmatprep.subr.bf16.mxu1 %v2501_v0 }
 0x467   :  { %2188 = vmatpush1.bf16.msra.mxu0 %v2585_v41  ;;  %2215 = vmatpush3.bf16.msra.mxu1 %v2608_v61 }
 0x468   :  { %2190 = vmatprep.subr.bf16.mxu0 %v2591_v44  ;;  %2216 = vmatprep.subr.bf16.mxu1 %v2501_v0 }
 0x46b   :  { %2192 = vmatpush1.bf16.msra.mxu0 %v2595_v50  ;;  %2218 = vmatpush3.bf16.msra.mxu1 %v2618_v6 }
 0x46c   :  { %2194 = vmatprep.subr.bf16.mxu0 %v2601_v53  ;;  %2219 = vmatprep.subr.bf16.mxu1 %v2501_v0 }
 0x46f   :  { %2196 = vmatpush1.bf16.msra.mxu0 %v2605_v59  ;;  %2221 = vmatpush3.bf16.msra.mxu1 %v2624_v11 }
 0x470   :  { %2198 = vmatprep.subr.bf16.mxu0 %v2611_v62  ;;  %2222 = vmatprep.subr.bf16.mxu1 %v2501_v0 }
 0x473   :  { %2200 = vmatpush1.bf16.msra.mxu0 %v2615_v4  ;;  %2224 = vmatpush3.bf16.msra.mxu1 %v2630_v14 }
 0x474   :  { %2226 = vmatprep.subr.bf16.mxu0 %v2553_v5  ;;  %2257 = vmatprep.subr.bf16.mxu1 %v2501_v0 }
 0x529   :  { %v841_v57 = vpop.f32.mrb[8].mxu0  ;;  %v912_v58 = vpop.f32.mrb[8].mxu1 }
 0x52a   :  { %v916_v60 = vadd.f32 %v841_v57, %v772_v56  ;;  %v843_v2 = vpop.f32.mrb[9].mxu0  ;;  %v1783_v3 = vpop.f32.mrb[9].mxu1  ;;  %v930_v20 = vadd.f32 %v2674_v36, %v912_v58 }
 0x52b   :  { %v923_v8 = vadd.f32 %v843_v2, %v773_v63 }
 0x52c   :  { %v1465_v7 = vmul.f32 -1.442695, %v916_v60  ;;  %v941_v60 = vld [vmem:[#allocation2 + $0x88] sm:$0xff] }
 0x52d   :  { %v1466_v12 = vmul.f32 -1.442695, %v923_v8 }
 0x52e   :  { %2385 = vpow2.f32 %v1465_v7 }
 0x52f   :  { %2387 = vpow2.f32 %v1466_v12 }
 0x538   :  { %v2386_v13 = vpop.eup %2385 }
 0x539   :  { %v920_v17 = vadd.f32 1.0, %v2386_v13  ;;  %v2388_v18 = vpop.eup %2387 }
 0x53a   :  { %v927_v19 = vadd.f32 1.0, %v2388_v18  ;;  %v1273_v18 = vld [vmem:[#allocation2 + $0xa8] sm:$0xff] }
 0x53b   :  { %2389 = vrcp.f32 %v920_v17 }
 0x53c   :  { %2391 = vrcp.f32 %v927_v19 }
 0x545   :  { %v2390_v22 = vpop.eup %2389 }
 0x546   :  { %v931_v25 = vmul.f32 %v2390_v22, %v930_v20  ;;  %v2392_v27 = vpop.eup %2391 }
 0x547   :  { %v934_v28 = vsub.f32 1.0, %v2392_v27  ;;  %v936_v33 = vmul.f32 %v2392_v27, %v2800_v55 }
 0x548   :  { %v932_v26 = vadd.f32 %v931_v25, %v774_v24  ;;  %v1274_v24 = vld [vmem:[#allocation2 + $0xb0] sm:$0xff] }
 0x54a   :  { %2393 = vtanh.f32 %v932_v26 }
 0x554   :  { %v2394_v30 = vpop.eup %2393 }
 0x555   :  { %v935_v31 = vmul.f32 %v2394_v30, %v934_v28 }
 0x557   :  { %v2841_v37 = vadd.f32 %v936_v33, %v935_v31 }
 0x559   :  { %1007 = vmatmul.mubr.f32.vlgmr.msra.gmra.mrb[10].mxu0 %v2841_v37  ;;  %1817 = vmatmul.mubr.f32.vlgmr.msra.gmra.mrb[10].mxu1 %v2841_v37 }
 0x55a   :  { %2228 = vmatpush1.bf16.msra.mxu0 %v2555_v9  ;;  %2259 = vmatpush3.bf16.msra.mxu1 %v2572_v29 }
 0x55b   :  { %2230 = vmatprep.subr.bf16.mxu0 %v2557_v10  ;;  %2260 = vmatprep.subr.bf16.mxu1 %v2501_v0 }
 0x55c   :  { %1173 = vmatprep.mubr.f32.mxu0 %v2502_v1  ;;  %1851 = vmatprep.mubr.msk.f32.mxu1 %vm2503_vm0, %v2502_v1 }
 0x55e   :  { %2232 = vmatpush1.bf16.msra.mxu0 %v2561_v15  ;;  %2262 = vmatpush3.bf16.msra.mxu1 %v2578_v34 }
 0x55f   :  { %2234 = vmatprep.subr.bf16.mxu0 %v2564_v16  ;;  %2263 = vmatprep.subr.bf16.mxu1 %v2501_v0 }
 0x562   :  { %2236 = vmatpush1.bf16.msra.mxu0 %v2567_v21  ;;  %2265 = vmatpush3.bf16.msra.mxu1 %v2588_v43 }
 0x563   :  { %2238 = vmatprep.subr.bf16.mxu0 %v2570_v23  ;;  %2266 = vmatprep.subr.bf16.mxu1 %v2501_v0 }
 0x566   :  { %2240 = vmatpush1.bf16.msra.mxu0 %v2575_v32  ;;  %2268 = vmatpush3.bf16.msra.mxu1 %v2598_v52 }
 0x567   :  { %2242 = vmatprep.subr.bf16.mxu0 %v2581_v35  ;;  %2269 = vmatprep.subr.bf16.mxu1 %v2501_v0 }
 0x56a   :  { %2244 = vmatpush1.bf16.msra.mxu0 %v2585_v41  ;;  %2271 = vmatpush3.bf16.msra.mxu1 %v2608_v61 }
 0x56b   :  { %2246 = vmatprep.subr.bf16.mxu0 %v2591_v44  ;;  %2272 = vmatprep.subr.bf16.mxu1 %v2501_v0 }
 0x56e   :  { %2248 = vmatpush1.bf16.msra.mxu0 %v2595_v50  ;;  %2274 = vmatpush3.bf16.msra.mxu1 %v2618_v6 }
 0x56f   :  { %2250 = vmatprep.subr.bf16.mxu0 %v2601_v53  ;;  %2275 = vmatprep.subr.bf16.mxu1 %v2501_v0 }
 0x572   :  { %2252 = vmatpush1.bf16.msra.mxu0 %v2605_v59  ;;  %2277 = vmatpush3.bf16.msra.mxu1 %v2624_v11 }
 0x573   :  { %2254 = vmatprep.subr.bf16.mxu0 %v2611_v62  ;;  %2278 = vmatprep.subr.bf16.mxu1 %v2501_v0 }
 0x576   :  { %2256 = vmatpush1.bf16.msra.mxu0 %v2615_v4  ;;  %2280 = vmatpush3.bf16.msra.mxu1 %v2630_v14 }
 0x577   :  { %2282 = vmatprep.subr.bf16.mxu0 %v2553_v5  ;;  %2313 = vmatprep.subr.bf16.mxu1 %v2501_v0 }
 0x62c   :  { %v1008_v39 = vpop.f32.mrb[10].mxu0  ;;  %v1079_v40 = vpop.f32.mrb[10].mxu1 }
 0x62d   :  { %v1083_v42 = vadd.f32 %v1008_v39, %v939_v38  ;;  %v1010_v46 = vpop.f32.mrb[11].mxu0  ;;  %v1818_v47 = vpop.f32.mrb[11].mxu1  ;;  %v1097_v5 = vadd.f32 %v2674_v36, %v1079_v40 }
 0x62e   :  { %v1090_v49 = vadd.f32 %v1010_v46, %v940_v45 }
 0x62f   :  { %v1467_v48 = vmul.f32 -1.442695, %v1083_v42  ;;  %v1275_v42 = vld [vmem:[#allocation2 + $0xb8] sm:$0xff] }
 0x630   :  { %v1468_v51 = vmul.f32 -1.442695, %v1090_v49 }
 0x631   :  { %2395 = vpow2.f32 %v1467_v48 }
 0x632   :  { %2397 = vpow2.f32 %v1468_v51 }
 0x63b   :  { %v2396_v54 = vpop.eup %2395 }
 0x63c   :  { %v1087_v55 = vadd.f32 1.0, %v2396_v54  ;;  %v2398_v56 = vpop.eup %2397 }
 0x63d   :  { %v1094_v57 = vadd.f32 1.0, %v2398_v56 }
 0x63e   :  { %2399 = vrcp.f32 %v1087_v55 }
 0x63f   :  { %2401 = vrcp.f32 %v1094_v57 }
 0x648   :  { %v2400_v58 = vpop.eup %2399 }
 0x649   :  { %v1098_v63 = vmul.f32 %v2400_v58, %v1097_v5  ;;  %v2402_v3 = vpop.eup %2401 }
 0x64a   :  { %v1101_v7 = vsub.f32 1.0, %v2402_v3  ;;  %v1103_v13 = vmul.f32 %v2402_v3, %v2841_v37 }
 0x64b   :  { %v1099_v2 = vadd.f32 %v1098_v63, %v941_v60 }
 0x64d   :  { %2403 = vtanh.f32 %v1099_v2 }
 0x657   :  { %v2404_v8 = vpop.eup %2403 }
 0x658   :  { %v1102_v12 = vmul.f32 %v2404_v8, %v1101_v7 }
 0x65a   :  { %v2882_v17 = vadd.f32 %v1103_v13, %v1102_v12 }
 0x65c   :  { %1174 = vmatmul.mubr.f32.vlgmr.msra.gmra.mrb[12].mxu0 %v2882_v17  ;;  %1852 = vmatmul.mubr.f32.vlgmr.msra.gmra.mrb[12].mxu1 %v2882_v17 }
 0x65d   :  { %2284 = vmatpush1.bf16.msra.mxu0 %v2555_v9  ;;  %2315 = vmatpush3.bf16.msra.mxu1 %v2572_v29 }
 0x65e   :  { %2286 = vmatprep.subr.bf16.mxu0 %v2557_v10  ;;  %2316 = vmatprep.subr.bf16.mxu1 %v2501_v0 }
 0x65f   :  { %1340 = vmatprep.mubr.f32.mxu0 %v2502_v1  ;;  %1886 = vmatprep.mubr.msk.f32.mxu1 %vm2503_vm0, %v2502_v1  ;;  %v1106_v1 = vld [vmem:[#allocation2 + $0x90] sm:$0xff] }
 0x661   :  { %2288 = vmatpush1.bf16.msra.mxu0 %v2561_v15  ;;  %2318 = vmatpush3.bf16.msra.mxu1 %v2578_v34 }
 0x662   :  { %2290 = vmatprep.subr.bf16.mxu0 %v2564_v16  ;;  %2319 = vmatprep.subr.bf16.mxu1 %v2501_v0  ;;  %v1107_v16 = vld [vmem:[#allocation2 + $0x98] sm:$0xff] }
 0x665   :  { %2292 = vmatpush1.bf16.msra.mxu0 %v2567_v21  ;;  %2321 = vmatpush3.bf16.msra.mxu1 %v2588_v43 }
 0x666   :  { %2294 = vmatprep.subr.bf16.mxu0 %v2570_v23  ;;  %2322 = vmatprep.subr.bf16.mxu1 %v2501_v0 }
 0x669   :  { %2296 = vmatpush1.bf16.msra.mxu0 %v2575_v32  ;;  %2324 = vmatpush3.bf16.msra.mxu1 %v2598_v52  ;;  %v1108_v52 = vld [vmem:[#allocation2 + $0xa0] sm:$0xff] }
 0x66a   :  { %2298 = vmatprep.subr.bf16.mxu0 %v2581_v35  ;;  %2325 = vmatprep.subr.bf16.mxu1 %v2501_v0 }
 0x66d   :  { %2300 = vmatpush1.bf16.msra.mxu0 %v2585_v41  ;;  %2327 = vmatpush3.bf16.msra.mxu1 %v2608_v61 }
 0x66e   :  { %2302 = vmatprep.subr.bf16.mxu0 %v2591_v44  ;;  %2328 = vmatprep.subr.bf16.mxu1 %v2501_v0 }
 0x671   :  { %2304 = vmatpush1.bf16.msra.mxu0 %v2595_v50  ;;  %2330 = vmatpush3.bf16.msra.mxu1 %v2618_v6 }
 0x672   :  { %2306 = vmatprep.subr.bf16.mxu0 %v2601_v53  ;;  %2331 = vmatprep.subr.bf16.mxu1 %v2501_v0 }
 0x675   :  { %2308 = vmatpush1.bf16.msra.mxu0 %v2605_v59  ;;  %2333 = vmatpush3.bf16.msra.mxu1 %v2624_v11 }
 0x676   :  { %2310 = vmatprep.subr.bf16.mxu0 %v2611_v62  ;;  %2334 = vmatprep.subr.bf16.mxu1 %v2501_v0 }
 0x679   :  { %2312 = vmatpush1.bf16.msra.mxu0 %v2615_v4  ;;  %2336 = vmatpush3.bf16.msra.mxu1 %v2630_v14 }
 0x72f   :  { %v1175_v9 = vpop.f32.mrb[12].mxu0  ;;  %v1246_v10 = vpop.f32.mrb[12].mxu1 }
 0x730   :  { %v1250_v15 = vadd.f32 %v1175_v9, %v1106_v1  ;;  %v1177_v21 = vpop.f32.mrb[13].mxu0  ;;  %v1853_v23 = vpop.f32.mrb[13].mxu1  ;;  %v1264_v44 = vadd.f32 %v2674_v36, %v1246_v10 }
 0x731   :  { %v1257_v32 = vadd.f32 %v1177_v21, %v1107_v16 }
 0x732   :  { %v1469_v29 = vmul.f32 -1.442695, %v1250_v15 }
 0x733   :  { %v1470_v34 = vmul.f32 -1.442695, %v1257_v32 }
 0x734   :  { %2405 = vpow2.f32 %v1469_v29 }
 0x735   :  { %2407 = vpow2.f32 %v1470_v34 }
 0x73e   :  { %v2406_v35 = vpop.eup %2405 }
 0x73f   :  { %v1254_v41 = vadd.f32 1.0, %v2406_v35  ;;  %v2408_v0 = vpop.eup %2407 }
 0x740   :  { %v1261_v43 = vadd.f32 1.0, %v2408_v0 }
 0x741   :  { %2409 = vrcp.f32 %v1254_v41 }
 0x742   :  { %2411 = vrcp.f32 %v1261_v43 }
 0x74b   :  { %v2410_v50 = vpop.eup %2409 }
 0x74c   :  { %v1265_v53 = vmul.f32 %v2410_v50, %v1264_v44  ;;  %v2412_v61 = vpop.eup %2411 }
 0x74d   :  { %v1268_v62 = vsub.f32 1.0, %v2412_v61  ;;  %v1270_v11 = vmul.f32 %v2412_v61, %v2882_v17 }
 0x74e   :  { %v1266_v59 = vadd.f32 %v1265_v53, %v1108_v52 }
 0x750   :  { %2413 = vtanh.f32 %v1266_v59 }
 0x75a   :  { %v2414_v4 = vpop.eup %2413 }
 0x75b   :  { %v1269_v6 = vmul.f32 %v2414_v4, %v1268_v62 }
 0x75d   :  { %v1271_v14 = vadd.f32 %v1270_v11, %v1269_v6 }
 0x75f   :  { %1341 = vmatmul.mubr.f32.vlgmr.msra.gmra.mrb[14].mxu0 %v1271_v14  ;;  %1887 = vmatmul.mubr.f32.vlgmr.msra.gmra.mrb[14].mxu1 %v1271_v14 }
 0x832   :  { %v1342_v19 = vpop.f32.mrb[14].mxu0  ;;  %v1413_v20 = vpop.f32.mrb[14].mxu1 }
 0x833   :  { %v1417_v22 = vadd.f32 %v1342_v19, %v1273_v18  ;;  %v1344_v25 = vpop.f32.mrb[15].mxu0  ;;  %v1888_v26 = vpop.f32.mrb[15].mxu1  ;;  %v1431_v39 = vadd.f32 %v2674_v36, %v1413_v20 }
 0x834   :  { %v1424_v28 = vadd.f32 %v1344_v25, %v1274_v24 }
 0x835   :  { %v1471_v27 = vmul.f32 -1.442695, %v1417_v22 }
 0x836   :  { %v1472_v30 = vmul.f32 -1.442695, %v1424_v28 }
 0x837   :  { %2415 = vpow2.f32 %v1471_v27 }
 0x838   :  { %2417 = vpow2.f32 %v1472_v30 }
 0x841   :  { %v2416_v31 = vpop.eup %2415 }
 0x842   :  { %v1421_v33 = vadd.f32 1.0, %v2416_v31  ;;  %v2418_v37 = vpop.eup %2417 }
 0x843   :  { %v1428_v38 = vadd.f32 1.0, %v2418_v37 }
 0x844   :  { %2419 = vrcp.f32 %v1421_v33 }
 0x845   :  { %2421 = vrcp.f32 %v1428_v38 }
 0x84e   :  { %v2420_v40 = vpop.eup %2419 }
 0x84f   :  { %v1432_v45 = vmul.f32 %v2420_v40, %v1431_v39  ;;  %v2422_v47 = vpop.eup %2421 }
 0x850   :  { %v1435_v48 = vsub.f32 1.0, %v2422_v47  ;;  %v1437_v54 = vmul.f32 %v2422_v47, %v1271_v14 }
 0x851   :  { %v1433_v46 = vadd.f32 %v1432_v45, %v1275_v42 }
 0x853   :  { %2423 = vtanh.f32 %v1433_v46 }
 0x85d   :  { %v2424_v49 = vpop.eup %2423 }
 0x85e   :  { %v1436_v51 = vmul.f32 %v2424_v49, %v1435_v48 }
 0x860   :  { %v1438_v55 = vadd.f32 %v1437_v54, %v1436_v51 }
 0x862   :  { %1439 = vst [vmem:[#allocation7] sm:$0xff] %v1438_v55 }
 0x863   :  { %2480 = shalt.err (!%p2477_p6)
}
 0x864   :  { %s2481_s15 = scalar_lea.hbm %s2937_s3, 128 }
 0x865   :  { %p2482_p7 = scmp.ne.s32.totalorder %s2937_s3, %s2481_s15  ;;  %p2485_p8 = scmp.lt.u32.totalorder %s2481_s15, %s2937_s3 }
 0x867   :  { %p2487_p9 = pnand %p2485_p8, %p2482_p7 }
 0x869   :  { %2490 = shalt.err (!%p2487_p9)
}
 0x86a   :  { %1449 = dma.vmem_to_hbm [thread:$0]  %s1447_s11, 128, %s2937_s3, [#allocation4]  }
 0x86b   :  { %2495 = dma.done.wait [#allocation4], 128  }
 0x86c   :  { %2496 = vsyncadd [#allocation4], 4294967168 }
 0x86d   :  { %1453 = vsyncpa [#allocation3], 1 }
 0x86e   :  { %1454 = vsyncpa [#allocation6], 1 }
 0x86f   :  { %1455 = vsyncpa [#allocation4], 1 }

</bundles_post_ra>
